<compile_context>
chip_gen: v7x
topology: tpu7x:2x2x1
jax: 0.10.0
libtpu: 0.0.40
codegen_flags: <defaults>
</compile_context>

<pallas_src>
import jax
import jax.numpy as jnp
from jax import lax
from jax.experimental import pallas as pl
from jax.experimental.pallas import tpu as pltpu


_VMEM_LIMIT_BYTES = 32 * 1024 * 1024    # scoped-VMEM limit passed to Mosaic (fits v5e/v6e/v7x)
_VMEM_BUDGET_BYTES = 24 * 1024 * 1024   # what the planner lets one grid step use (headroom left)
_FUSED_MAX_IDS = 4096                   # padded users+items above which one-hot gather loses
_FUSED_MAX_TABLE_BYTES = 4 * 1024 * 1024


def _round_up(x, m):
    return (x + m - 1) // m * m


def _default_max_tb():
    """Generation-aware batch-tile cap: 1024 on v5e/v6e (128 MiB VMEM), 512 otherwise (v7x)."""
    try:
        kind = jax.devices()[0].device_kind.lower()
    except Exception:
        return 512
    if "v5" in kind or "v6" in kind:
        return 1024
    return 512


# --------------------------------------------------------------------------
# Kernels
# --------------------------------------------------------------------------
def _mf_fused_kernel(uidx_ref, iidx_ref, uf_ref, if_ref, out_ref):
    """Fused on-chip gather (exact one-hot MXU matmul) + factor-dim reduce.

    uidx_ref, iidx_ref : (1, TB)       int32  user / item ids for this tile
    uf_ref             : (F, n_users)  f32    transposed user factors (VMEM-resident)
    if_ref             : (F, n_items)  f32    transposed item factors (VMEM-resident)
    out_ref            : (3, TB)       f32    rows = [pred, qu, pi], batch on lanes
    """
    tb = out_ref.shape[1]
    n_users = uf_ref.shape[1]
    n_items = if_ref.shape[1]

    # --- user side first: u_hot's live range ends before i_hot is built ---
    u_hot = (lax.broadcasted_iota(jnp.int32, (n_users, tb), 0)
             == uidx_ref[...]).astype(jnp.float32)                     # (n_users, TB)
    u = jnp.dot(uf_ref[...], u_hot,
                precision=lax.Precision.HIGHEST,
                preferred_element_type=jnp.float32)                    # (F, TB)
    out_ref[1:2, :] = jnp.sum(u * u, axis=0, keepdims=True)            # qu

    # --- item side ---
    i_hot = (lax.broadcasted_iota(jnp.int32, (n_items, tb), 0)
             == iidx_ref[...]).astype(jnp.float32)                     # (n_items, TB)
    v = jnp.dot(if_ref[...], i_hot,
                precision=lax.Precision.HIGHEST,
                preferred_element_type=jnp.float32)                    # (F, TB)
    out_ref[2:3, :] = jnp.sum(v * v, axis=0, keepdims=True)            # pi

    out_ref[0:1, :] = jnp.sum(u * v, axis=0, keepdims=True)            # pred


def _mf_pregather_kernel(u_ref, v_ref, out_ref):
    """Large-table path: rows already gathered; pure VPU multiply + sublane reduce.

    u_ref, v_ref : (F, TB) f32 lane-dense gathered factor rows
    out_ref      : (3, TB) f32 rows = [pred, qu, pi]
    """
    u = u_ref[...]
    v = v_ref[...]
    out_ref[0:1, :] = jnp.sum(u * v, axis=0, keepdims=True)
    out_ref[1:2, :] = jnp.sum(u * u, axis=0, keepdims=True)
    out_ref[2:3, :] = jnp.sum(v * v, axis=0, keepdims=True)


# --------------------------------------------------------------------------
# Wrapper
# --------------------------------------------------------------------------
def mf_forward(user_idx, item_idx, user_factors_t, item_factors_t,
               *, max_tb=None, force_path=None):
    """MF forward pass.

    user_factors_t : (F, n_users) float32, pre-transposed user factor table
    item_factors_t : (F, n_items) float32, pre-transposed item factor table
    Returns (pred, qu, pi), each shape (B,) float32.
    """
    B = int(user_idx.shape[0])
    F, n_users = user_factors_t.shape
    _, n_items = item_factors_t.shape

    if max_tb is None:
        max_tb = _default_max_tb()

    f_pad = _round_up(F, 8)
    n_u_pad = _round_up(n_users, 128)
    n_i_pad = _round_up(n_items, 128)

    # ---- VMEM plan per grid step (includes the one-hot temporaries) -------
    # Resident tables (budgeted at 2 copies in case single-buffering is not honored).
    table_bytes = 4 * f_pad * (n_u_pad + n_i_pad)
    # Bytes per batch lane inside the fused kernel (with generous margins for
    # the HIGHEST-precision matmul operand handling):
    #   one-hots                          : ~6 * (n_u_pad + n_i_pad)
    #   u, v and elementwise temporaries  : ~8 * 4 * f_pad
    #   idx inputs (2x, double-buffered,
    #   padded to 8 i32 sublanes) + output: ~256
    per_lane_fused = 6 * (n_u_pad + n_i_pad) + 32 * f_pad + 256
    fused_tb_cap = ((_VMEM_BUDGET_BYTES - 2 * table_bytes)
                    // per_lane_fused // 128) * 128

    use_fused = (
        n_u_pad + n_i_pad <= _FUSED_MAX_IDS
        and table_bytes <= _FUSED_MAX_TABLE_BYTES
        and fused_tb_cap >= 128
    )
    if force_path == "fused":
        use_fused = True
    elif force_path == "pregather":
        use_fused = False

    if use_fused:
        tb_max = min(max_tb, fused_tb_cap)
    else:
        per_lane_pg = 32 * f_pad + 64        # 2 gathered inputs (2x buffered) + temps + out
        tb_max = min(2048, max(128, (_VMEM_BUDGET_BYTES // per_lane_pg // 128) * 128))

    # ---- batch tiling: big lane-dense tiles, >=2 grid steps when possible ----
    b128 = _round_up(max(B, 1), 128)
    tb = min(tb_max, b128)
    if pl.cdiv(b128, tb) < 2 and b128 >= 256:
        tb = _round_up(b128 // 2, 128)       # give both v7x TensorCores work
    b_pad = _round_up(B, tb)
    grid = (b_pad // tb,)

    # Pad ids to the tile multiple; id 0 is a valid row, padded results are sliced off.
    # TODO(synk): out-of-range / negative ids silently gather a zero row here,
    # whereas torch.nn.Embedding raises; add pl.debug_check if that matters.
    uidx = jnp.pad(user_idx.astype(jnp.int32), (0, b_pad - B)).reshape(1, b_pad)
    iidx = jnp.pad(item_idx.astype(jnp.int32), (0, b_pad - B)).reshape(1, b_pad)

    compiler_params = pltpu.CompilerParams(
        dimension_semantics=("parallel",),
        vmem_limit_bytes=_VMEM_LIMIT_BYTES,
    )
    out_spec = pl.BlockSpec((3, tb), lambda i: (0, i))
    out_shape = jax.ShapeDtypeStruct((3, b_pad), jnp.float32)

    if use_fused:
        def table_spec(n, single_buffer):
            if single_buffer:
                # Constant index_map -> table fetched once; no need to double-buffer.
                return pl.BlockSpec((F, n), lambda i: (0, 0),
                                    pipeline_mode=pl.Buffered(1))
            return pl.BlockSpec((F, n), lambda i: (0, 0))

        def run_fused(single_buffer):
            return pl.pallas_call(
                _mf_fused_kernel,
                out_shape=out_shape,
                grid_spec=pltpu.PrefetchScalarGridSpec(
                    num_scalar_prefetch=0,
                    grid=grid,
                    in_specs=[
                        pl.BlockSpec((1, tb), lambda i: (0, i)),   # user ids
                        pl.BlockSpec((1, tb), lambda i: (0, i)),   # item ids
                        table_spec(n_users, single_buffer),        # user factors^T (resident)
                        table_spec(n_items, single_buffer),        # item factors^T (resident)
                    ],
                    out_specs=out_spec,
                ),
                compiler_params=compiler_params,
            )(uidx, iidx, user_factors_t, item_factors_t)

        try:
            out = run_fused(True)
        except Exception:
            # pl.Buffered(1) not honored on this jax version: fall back to the
            # default double-buffered resident tables (already budgeted for).
            out = run_fused(False)
    else:
        # Large tables: gather on HBM outside the kernel (~4*F bytes per row of
        # traffic), kernel is a pure VPU multiply + sublane reduce.
        u_g = jnp.take(user_factors_t, uidx[0], axis=1)            # (F, b_pad)
        v_g = jnp.take(item_factors_t, iidx[0], axis=1)            # (F, b_pad)
        out = pl.pallas_call(
            _mf_pregather_kernel,
            out_shape=out_shape,
            grid_spec=pltpu.PrefetchScalarGridSpec(
                num_scalar_prefetch=0,
                grid=grid,
                in_specs=[
                    pl.BlockSpec((F, tb), lambda i: (0, i)),
                    pl.BlockSpec((F, tb), lambda i: (0, i)),
                ],
                out_specs=out_spec,
            ),
            compiler_params=compiler_params,
        )(u_g, v_g)

    return out[0, :B], out[1, :B], out[2, :B]


# --------------------------------------------------------------------------
# Model
# --------------------------------------------------------------------------
class BaseModelPallas:
    """JAX/Pallas port of the PyTorch BaseModel (matrix factorization)."""

    def __init__(self, n_users, n_items, n_factors=40, key=None):
        if key is None:
            key = jax.random.PRNGKey(0)
        k_ub, k_ib, k_uf, k_if = jax.random.split(key, 4)
        self.n_users = n_users
        self.n_items = n_items
        self.n_factors = n_factors
        # Biases follow default nn.Embedding init N(0,1); intentionally unused
        # in forward (matches the given PyTorch forward).
        self.user_biases = jax.random.normal(k_ub, (n_users, 1), jnp.float32)
        self.item_biases = jax.random.normal(k_ib, (n_items, 1), jnp.float32)
        # Factors: torch.nn.init.normal_(std=0.01).
        self.user_factors = 0.01 * jax.random.normal(
            k_uf, (n_users, n_factors), jnp.float32)
        self.item_factors = 0.01 * jax.random.normal(
            k_if, (n_items, n_factors), jnp.float32)
        # Pre-transposed f32 copies consumed by the kernel: hoists the per-call
        # transpose/cast (a full HBM read+write of both tables) out of forward.
        self.user_factors_t = jnp.asarray(self.user_factors.T, jnp.float32)
        self.item_factors_t = jnp.asarray(self.item_factors.T, jnp.float32)

    def forward(self, user, item, **kw):
        return mf_forward(user, item, self.user_factors_t, self.item_factors_t, **kw)

    def predict(self, user, item):
        return self.forward(user, item)


# --------------------------------------------------------------------------
# Demo / self-check
# --------------------------------------------------------------------------
if __name__ == "__main__":
    key = jax.random.PRNGKey(0)
    k_model = jax.random.fold_in(key, 1)

    n_users, n_items, n_factors = 50, 60, 40
    model = BaseModelPallas(n_users, n_items, n_factors, key=k_model)

    def reference(user, item):
        um = jnp.take(model.user_factors, user, axis=0)
        im = jnp.take(model.item_factors, item, axis=0)
        return (jnp.sum(um * im, axis=1),
                jnp.sum(um ** 2, axis=1),
                jnp.sum(im ** 2, axis=1))

    def check(batch, **kw):
        ku, ki = jax.random.split(jax.random.fold_in(key, 100 + batch), 2)
        user = jax.random.randint(ku, (batch,), 0, n_users, dtype=jnp.int32)
        item = jax.random.randint(ki, (batch,), 0, n_items, dtype=jnp.int32)
        pred, qu, pi = model.forward(user, item, **kw)
        jax.block_until_ready((pred, qu, pi))
        r_pred, r_qu, r_pi = reference(user, item)
        assert pred.shape == (batch,) and qu.shape == (batch,) and pi.shape == (batch,)
        # precision=HIGHEST makes the one-hot MXU gather exact; remaining slack
        # is only f32 reduction reassociation over n_factors terms.
        assert jnp.allclose(pred, r_pred, atol=1e-6, rtol=1e-5)
        assert jnp.allclose(qu, r_qu, atol=1e-6, rtol=1e-5)
        assert jnp.allclose(pi, r_pi, atol=1e-6, rtol=1e-5)

    check(16)                              # single-tile fused path
    check(300)                             # multi-tile fused path (>=2 grid steps)
    check(16, force_path="pregather")      # large-table fallback path

    print("KERNEL_OK")
</pallas_src>

<mosaic_0001>
module attributes {stable_mosaic.version = 11 : i64} {
  func.func @_mf_fused_kernel(%arg0: i32, %arg1: memref<1x128xi32, #tpu.memory_space<vmem>>, %arg2: memref<1x128xi32, #tpu.memory_space<vmem>>, %arg3: memref<40x50xf32, #tpu.memory_space<vmem>>, %arg4: memref<40x60xf32, #tpu.memory_space<vmem>>, %arg5: memref<3x128xf32, #tpu.memory_space<vmem>>) attributes {dimension_semantics = [#tpu.dimension_semantics<parallel>], iteration_bounds = array<i64: 1>, scalar_prefetch = 0 : i64, scratch_operands = 0 : i64, tpu.core_type = #tpu.core_type<tc>, window_params = [{transform_indices = @transform_0, window_bounds = array<i64: 1, 128>}, {transform_indices = @transform_1, window_bounds = array<i64: 1, 128>}, {pipeline_mode = #tpu.pipeline_mode<synchronous>, transform_indices = @transform_2, window_bounds = array<i64: 40, 50>}, {pipeline_mode = #tpu.pipeline_mode<synchronous>, transform_indices = @transform_3, window_bounds = array<i64: 40, 60>}, {transform_indices = @transform_4, window_bounds = array<i64: 3, 128>}]} {
    %0 = tpu.iota {dimensions = array<i32: 0>} : vector<50x128xi32>
    %c0 = arith.constant 0 : index
    %c0_0 = arith.constant 0 : index
    %1 = vector.load %arg1[%c0, %c0_0] : memref<1x128xi32, #tpu.memory_space<vmem>>, vector<1x128xi32>
    %2 = vector.broadcast %1 : vector<1x128xi32> to vector<50x128xi32>
    %3 = arith.cmpi eq, %0, %2 : vector<50x128xi32>
    %4 = arith.extui %3 : vector<50x128xi1> to vector<50x128xi32>
    %5 = arith.sitofp %4 : vector<50x128xi32> to vector<50x128xf32>
    %c0_1 = arith.constant 0 : index
    %c0_2 = arith.constant 0 : index
    %6 = vector.load %arg3[%c0_1, %c0_2] : memref<40x50xf32, #tpu.memory_space<vmem>>, vector<40x50xf32>
    %cst = arith.constant dense<0.000000e+00> : vector<40x128xf32>
    %7 = tpu.matmul %6, %5, %cst {dimension_numbers = #tpu.dot_dimension_numbers<[1], [0], [0], [1], [0, 0, 1, 1], [], []>, precision = #tpu.contract_precision<fp32>} : vector<40x50xf32>, vector<50x128xf32>, vector<40x128xf32> -> vector<40x128xf32>
    %8 = arith.mulf %7, %7 : vector<40x128xf32>
    %cst_3 = arith.constant dense<0.000000e+00> : vector<128xf32>
    %9 = vector.multi_reduction <add>, %8, %cst_3 [0] : vector<40x128xf32> to vector<128xf32>
    %10 = vector.shape_cast %9 : vector<128xf32> to vector<1x128xf32>
    %c1 = arith.constant 1 : index
    %c0_4 = arith.constant 0 : index
    %11 = vector.load %arg5[%c1, %c0_4] : memref<3x128xf32, #tpu.memory_space<vmem>>, vector<1x128xf32>
    tpu.vector_store %arg5[%c1, %c0_4], %10 {strides = array<i32>} : memref<3x128xf32, #tpu.memory_space<vmem>>, vector<1x128xf32>,
    %12 = tpu.iota {dimensions = array<i32: 0>} : vector<60x128xi32>
    %c0_5 = arith.constant 0 : index
    %c0_6 = arith.constant 0 : index
    %13 = vector.load %arg2[%c0_5, %c0_6] : memref<1x128xi32, #tpu.memory_space<vmem>>, vector<1x128xi32>
    %14 = vector.broadcast %13 : vector<1x128xi32> to vector<60x128xi32>
    %15 = arith.cmpi eq, %12, %14 : vector<60x128xi32>
    %16 = arith.extui %15 : vector<60x128xi1> to vector<60x128xi32>
    %17 = arith.sitofp %16 : vector<60x128xi32> to vector<60x128xf32>
    %c0_7 = arith.constant 0 : index
    %c0_8 = arith.constant 0 : index
    %18 = vector.load %arg4[%c0_7, %c0_8] : memref<40x60xf32, #tpu.memory_space<vmem>>, vector<40x60xf32>
    %cst_9 = arith.constant dense<0.000000e+00> : vector<40x128xf32>
    %19 = tpu.matmul %18, %17, %cst_9 {dimension_numbers = #tpu.dot_dimension_numbers<[1], [0], [0], [1], [0, 0, 1, 1], [], []>, precision = #tpu.contract_precision<fp32>} : vector<40x60xf32>, vector<60x128xf32>, vector<40x128xf32> -> vector<40x128xf32>
    %20 = arith.mulf %19, %19 : vector<40x128xf32>
    %cst_10 = arith.constant dense<0.000000e+00> : vector<128xf32>
    %21 = vector.multi_reduction <add>, %20, %cst_10 [0] : vector<40x128xf32> to vector<128xf32>
    %22 = vector.shape_cast %21 : vector<128xf32> to vector<1x128xf32>
    %c2 = arith.constant 2 : index
    %c0_11 = arith.constant 0 : index
    %23 = vector.load %arg5[%c2, %c0_11] : memref<3x128xf32, #tpu.memory_space<vmem>>, vector<1x128xf32>
    tpu.vector_store %arg5[%c2, %c0_11], %22 {strides = array<i32>} : memref<3x128xf32, #tpu.memory_space<vmem>>, vector<1x128xf32>,
    %24 = arith.mulf %7, %19 : vector<40x128xf32>
    %cst_12 = arith.constant dense<0.000000e+00> : vector<128xf32>
    %25 = vector.multi_reduction <add>, %24, %cst_12 [0] : vector<40x128xf32> to vector<128xf32>
    %26 = vector.shape_cast %25 : vector<128xf32> to vector<1x128xf32>
    %c0_13 = arith.constant 0 : index
    %c0_14 = arith.constant 0 : index
    %27 = vector.load %arg5[%c0_13, %c0_14] : memref<3x128xf32, #tpu.memory_space<vmem>>, vector<1x128xf32>
    tpu.vector_store %arg5[%c0_13, %c0_14], %26 {strides = array<i32>} : memref<3x128xf32, #tpu.memory_space<vmem>>, vector<1x128xf32>,
    return
  }
  func.func @transform_0(%arg0: i32) -> (i32, i32) {
    %c0_i32 = arith.constant 0 : i32
    %c0_i32_0 = arith.constant 0 : i32
    return %c0_i32, %arg0 : i32, i32
  }
  func.func @transform_1(%arg0: i32) -> (i32, i32) {
    %c0_i32 = arith.constant 0 : i32
    %c0_i32_0 = arith.constant 0 : i32
    return %c0_i32, %arg0 : i32, i32
  }
  func.func @transform_2(%arg0: i32) -> (i32, i32) {
    %c0_i32 = arith.constant 0 : i32
    %c0_i32_0 = arith.constant 0 : i32
    %c0_i32_1 = arith.constant 0 : i32
    return %c0_i32, %c0_i32_0 : i32, i32
  }
  func.func @transform_3(%arg0: i32) -> (i32, i32) {
    %c0_i32 = arith.constant 0 : i32
    %c0_i32_0 = arith.constant 0 : i32
    %c0_i32_1 = arith.constant 0 : i32
    return %c0_i32, %c0_i32_0 : i32, i32
  }
  func.func @transform_4(%arg0: i32) -> (i32, i32) {
    %c0_i32 = arith.constant 0 : i32
    %c0_i32_0 = arith.constant 0 : i32
    return %c0_i32, %arg0 : i32, i32
  }
}

module attributes {stable_mosaic.version = 11 : i64} {
  func.func @_mf_fused_kernel(%arg0: i32, %arg1: memref<1x128xi32, #tpu.memory_space<vmem>>, %arg2: memref<1x128xi32, #tpu.memory_space<vmem>>, %arg3: memref<40x50xf32, #tpu.memory_space<vmem>>, %arg4: memref<40x60xf32, #tpu.memory_space<vmem>>, %arg5: memref<3x128xf32, #tpu.memory_space<vmem>>) attributes {dimension_semantics = [#tpu.dimension_semantics<parallel>], iteration_bounds = array<i64: 1>, scalar_prefetch = 0 : i64, scratch_operands = 0 : i64, tpu.core_type = #tpu.core_type<tc>, window_params = [{transform_indices = @transform_0, window_bounds = array<i64: 1, 128>}, {transform_indices = @transform_1, window_bounds = array<i64: 1, 128>}, {pipeline_mode = #tpu.pipeline_mode<synchronous>, transform_indices = @transform_2, window_bounds = array<i64: 40, 50>}, {pipeline_mode = #tpu.pipeline_mode<synchronous>, transform_indices = @transform_3, window_bounds = array<i64: 40, 60>}, {transform_indices = @transform_4, window_bounds = array<i64: 3, 128>}]} {
    %0 = tpu.iota {dimensions = array<i32: 0>} : vector<50x128xi32>
    %c0 = arith.constant 0 : index
    %c0_0 = arith.constant 0 : index
    %1 = vector.load %arg1[%c0, %c0_0] : memref<1x128xi32, #tpu.memory_space<vmem>>, vector<1x128xi32>
    %2 = vector.broadcast %1 : vector<1x128xi32> to vector<50x128xi32>
    %3 = arith.cmpi eq, %0, %2 : vector<50x128xi32>
    %4 = arith.extui %3 : vector<50x128xi1> to vector<50x128xi32>
    %5 = arith.sitofp %4 : vector<50x128xi32> to vector<50x128xf32>
    %c0_1 = arith.constant 0 : index
    %c0_2 = arith.constant 0 : index
    %6 = vector.load %arg3[%c0_1, %c0_2] : memref<40x50xf32, #tpu.memory_space<vmem>>, vector<40x50xf32>
    %cst = arith.constant dense<0.000000e+00> : vector<40x128xf32>
    %7 = tpu.matmul %6, %5, %cst {dimension_numbers = #tpu.dot_dimension_numbers<[1], [0], [0], [1], [0, 0, 1, 1], [], []>, precision = #tpu.contract_precision<fp32>} : vector<40x50xf32>, vector<50x128xf32>, vector<40x128xf32> -> vector<40x128xf32>
    %8 = arith.mulf %7, %7 : vector<40x128xf32>
    %cst_3 = arith.constant dense<0.000000e+00> : vector<128xf32>
    %9 = vector.multi_reduction <add>, %8, %cst_3 [0] : vector<40x128xf32> to vector<128xf32>
    %10 = vector.shape_cast %9 : vector<128xf32> to vector<1x128xf32>
    %c1 = arith.constant 1 : index
    %c0_4 = arith.constant 0 : index
    %11 = vector.load %arg5[%c1, %c0_4] : memref<3x128xf32, #tpu.memory_space<vmem>>, vector<1x128xf32>
    tpu.vector_store %arg5[%c1, %c0_4], %10 {strides = array<i32>} : memref<3x128xf32, #tpu.memory_space<vmem>>, vector<1x128xf32>,
    %12 = tpu.iota {dimensions = array<i32: 0>} : vector<60x128xi32>
    %c0_5 = arith.constant 0 : index
    %c0_6 = arith.constant 0 : index
    %13 = vector.load %arg2[%c0_5, %c0_6] : memref<1x128xi32, #tpu.memory_space<vmem>>, vector<1x128xi32>
    %14 = vector.broadcast %13 : vector<1x128xi32> to vector<60x128xi32>
    %15 = arith.cmpi eq, %12, %14 : vector<60x128xi32>
    %16 = arith.extui %15 : vector<60x128xi1> to vector<60x128xi32>
    %17 = arith.sitofp %16 : vector<60x128xi32> to vector<60x128xf32>
    %c0_7 = arith.constant 0 : index
    %c0_8 = arith.constant 0 : index
    %18 = vector.load %arg4[%c0_7, %c0_8] : memref<40x60xf32, #tpu.memory_space<vmem>>, vector<40x60xf32>
    %cst_9 = arith.constant dense<0.000000e+00> : vector<40x128xf32>
    %19 = tpu.matmul %18, %17, %cst_9 {dimension_numbers = #tpu.dot_dimension_numbers<[1], [0], [0], [1], [0, 0, 1, 1], [], []>, precision = #tpu.contract_precision<fp32>} : vector<40x60xf32>, vector<60x128xf32>, vector<40x128xf32> -> vector<40x128xf32>
    %20 = arith.mulf %19, %19 : vector<40x128xf32>
    %cst_10 = arith.constant dense<0.000000e+00> : vector<128xf32>
    %21 = vector.multi_reduction <add>, %20, %cst_10 [0] : vector<40x128xf32> to vector<128xf32>
    %22 = vector.shape_cast %21 : vector<128xf32> to vector<1x128xf32>
    %c2 = arith.constant 2 : index
    %c0_11 = arith.constant 0 : index
    %23 = vector.load %arg5[%c2, %c0_11] : memref<3x128xf32, #tpu.memory_space<vmem>>, vector<1x128xf32>
    tpu.vector_store %arg5[%c2, %c0_11], %22 {strides = array<i32>} : memref<3x128xf32, #tpu.memory_space<vmem>>, vector<1x128xf32>,
    %24 = arith.mulf %7, %19 : vector<40x128xf32>
    %cst_12 = arith.constant dense<0.000000e+00> : vector<128xf32>
    %25 = vector.multi_reduction <add>, %24, %cst_12 [0] : vector<40x128xf32> to vector<128xf32>
    %26 = vector.shape_cast %25 : vector<128xf32> to vector<1x128xf32>
    %c0_13 = arith.constant 0 : index
    %c0_14 = arith.constant 0 : index
    %27 = vector.load %arg5[%c0_13, %c0_14] : memref<3x128xf32, #tpu.memory_space<vmem>>, vector<1x128xf32>
    tpu.vector_store %arg5[%c0_13, %c0_14], %26 {strides = array<i32>} : memref<3x128xf32, #tpu.memory_space<vmem>>, vector<1x128xf32>,
    return
  }
  func.func @transform_0(%arg0: i32) -> (i32, i32) {
    %c0_i32 = arith.constant 0 : i32
    %c0_i32_0 = arith.constant 0 : i32
    return %c0_i32, %arg0 : i32, i32
  }
  func.func @transform_1(%arg0: i32) -> (i32, i32) {
    %c0_i32 = arith.constant 0 : i32
    %c0_i32_0 = arith.constant 0 : i32
    return %c0_i32, %arg0 : i32, i32
  }
  func.func @transform_2(%arg0: i32) -> (i32, i32) {
    %c0_i32 = arith.constant 0 : i32
    %c0_i32_0 = arith.constant 0 : i32
    %c0_i32_1 = arith.constant 0 : i32
    return %c0_i32, %c0_i32_0 : i32, i32
  }
  func.func @transform_3(%arg0: i32) -> (i32, i32) {
    %c0_i32 = arith.constant 0 : i32
    %c0_i32_0 = arith.constant 0 : i32
    %c0_i32_1 = arith.constant 0 : i32
    return %c0_i32, %c0_i32_0 : i32, i32
  }
  func.func @transform_4(%arg0: i32) -> (i32, i32) {
    %c0_i32 = arith.constant 0 : i32
    %c0_i32_0 = arith.constant 0 : i32
    return %c0_i32, %arg0 : i32, i32
  }
}

</mosaic_0001>

<bundles_post_ra>
// kernel: tpu_custom_call.1
= control target key start
LH: loop header
LB: loop body
LE: loop exit
PB: predicated region body
PF: predicated region fallthrough
CT: control target
= control target key end

     0   :  { %9 = vsyncpa [#allocation3], 0  ;;  %s3303_s0 = inlined_call_operand.hbm [shape: s32[1,128], index: 0, kind: input, shape index: {}]   ;;  %s3304_s1 = inlined_call_operand.vmem [shape: s32[1,128], index: 1, kind: input, shape index: {}]   ;;  %s3305_s2 = inlined_call_operand.hbm [shape: f32[40,50], index: 2, kind: input, shape index: {}]   ;;  %s3306_s3 = inlined_call_operand.hbm [shape: f32[40,60], index: 3, kind: input, shape index: {}]   ;;  %s3307_s4 = inlined_call_operand.hbm [shape: f32[3,128], index: 4, kind: output, shape index: {}]  }
   0x1   :  { %10 = vsyncpa [#allocation6], 0 }
   0x2   :  { %11 = vsyncpa [#allocation4], 0  ;;  %s2546_s15 = smov [#allocation5]   ;;  %s2452_s19 = scalar_lea.hbm %s3305_s2, 640 }
   0x3   :  { %s29_s16 = sshll.u32 %s2546_s15, 4  ;;  %p2453_p0 = scmp.ne.s32.totalorder %s3305_s2, %s2452_s19  ;;  %s30_s16 = int_to_ptr.vmem [resolvable:$true] %s29_s16 }
   0x4   :  { %p2456_p1 = scmp.lt.u32.totalorder %s2452_s19, %s3305_s2 }
   0x6   :  { %p2458_p2 = pnand %p2456_p1, %p2453_p0 }
   0x8   :  { %2461 = shalt.err (!%p2458_p2)
}
   0x9   :  { %s2462_s24 = scalar_lea.vmem %s30_s16, 640  ;;  %p2467_p4 = scmp.lt.s32.totalorder %s30_s16, %s30_s16 }
   0xa   :  { %p2463_p3 = scmp.ne.s32.totalorder %s30_s16, %s2462_s24  ;;  %p2468_p5 = scmp.lt.s32.totalorder %s2462_s24, %s2462_s24 }
   0xc   :  { %p2469_p6 = por %p2468_p5, %p2467_p4 }
   0xe   :  { %p2470_p7 = pnand %p2469_p6, %p2463_p3 }
  0x10   :  { %2473 = shalt.err (!%p2470_p7)
}
  0x11   :  { %s2547_s25 = smov 128   ;;  %s2548_s26 = smov 8  }
  0x12   :  { %35 = dma.hbm_to_vmem [thread:$0]  %s3305_s2, 640, %s30_s16, [#allocation6], %s2547_s25, %s2547_s25, %s2548_s26  }
  0x13   :  { %s2549_s29 = smov [#allocation2]   ;;  %s2550_s5 = smov [#allocation7]  }
  0x14   :  { %s18_s30 = sshll.u32 %s2549_s29, 4  ;;  %s41_s6 = sshll.u32 %s2550_s5, 4  ;;  %s19_s30 = int_to_ptr.vmem [resolvable:$true] %s18_s30  ;;  %s42_s6 = int_to_ptr.vmem [resolvable:$true] %s41_s6 }
  0x15   :  { %s2474_s9 = scalar_lea.hbm %s3303_s0, 16 }
  0x16   :  { %p2475_p8 = scmp.ne.s32.totalorder %s3303_s0, %s2474_s9  ;;  %p2478_p9 = scmp.lt.u32.totalorder %s2474_s9, %s3303_s0 }
  0x18   :  { %p2480_p10 = pnand %p2478_p9, %p2475_p8 }
  0x1a   :  { %2483 = shalt.err (!%p2480_p10)
}
  0x1b   :  { %s2484_s2 = scalar_lea.vmem %s19_s30, 16  ;;  %s2488_s14 = scalar_lea.vmem %s19_s30, 32 }
  0x1c   :  { %p2485_p11 = scmp.ne.s32.totalorder %s19_s30, %s2484_s2  ;;  %p2489_p12 = scmp.lt.s32.totalorder %s19_s30, %s19_s30 }
  0x1d   :  { %p2490_p13 = scmp.lt.s32.totalorder %s2488_s14, %s2484_s2 }
  0x1f   :  { %p2491_p0 = por %p2490_p13, %p2489_p12 }
  0x21   :  { %p2492_p1 = pnand %p2491_p0, %p2485_p11 }
  0x23   :  { %2495 = shalt.err (!%p2492_p1)
}
  0x24   :  { %21 = dma.hbm_to_vmem [thread:$0]  %s3303_s0, 16, %s19_s30, [#allocation3]  }
  0x25   :  { %s2496_s19 = scalar_lea.hbm %s3306_s3, 640 }
  0x26   :  { %p2497_p2 = scmp.ne.s32.totalorder %s3306_s3, %s2496_s19  ;;  %p2500_p3 = scmp.lt.u32.totalorder %s2496_s19, %s3306_s3 }
  0x28   :  { %p2502_p4 = pnand %p2500_p3, %p2497_p2 }
  0x2a   :  { %2505 = shalt.err (!%p2502_p4)
}
  0x2b   :  { %s2506_s24 = scalar_lea.vmem %s42_s6, 640  ;;  %p2511_p6 = scmp.lt.s32.totalorder %s42_s6, %s42_s6 }
  0x2c   :  { %p2507_p5 = scmp.ne.s32.totalorder %s42_s6, %s2506_s24  ;;  %p2512_p7 = scmp.lt.s32.totalorder %s2506_s24, %s2506_s24 }
  0x2e   :  { %p2513_p8 = por %p2512_p7, %p2511_p6 }
  0x30   :  { %p2514_p9 = pnand %p2513_p8, %p2507_p5 }
  0x32   :  { %2517 = shalt.err (!%p2514_p9)
}
  0x33   :  { %47 = dma.hbm_to_vmem [thread:$0]  %s3306_s3, 640, %s42_s6, [#allocation6], %s2547_s25, %s2547_s25, %s2548_s26  }
  0x34   :  { %2540 = dma.done.wait [#allocation3], 16  }
  0x35   :  { %2541 = vsyncadd [#allocation3], 4294967280 }
  0x36   :  { %2542 = dma.done.wait [#allocation6], 1280  }
  0x37   :  { %2543 = vsyncadd [#allocation6], 4294966016  ;;  %v57_v0 = vlaneseq  ;;  %v3330_v1 = vmov 0.0|0.0   ;;  %vm2552_vm0 = vmmov 0   ;;  %v2553_v3 = vmov 0.0   ;;  %v91_v13 = vld [vmem:[#allocation5] sm:$0xff] }
  0x38   :  { %2212 = vmatprep.subr.bf16.mxu0 %v3330_v1  ;;  %2266 = vmatprep.subr.bf16.mxu1 %v3330_v1  ;;  %vm96_vm1 = vcmask 408576   ;;  %v2634_v9 = vld [vmem:[#allocation2] ss:$0 sm:$0xff]  ;;  %v3309_v19 = vmov 1.0|1.0   ;;  %vm112_vm13 = vcmask 1041408  }
  0x39   :  { %v58_v2 = vshrl.u32 %v57_v0, 7  ;;  %1866 = vmatprep.mubr.msk.f32.mxu0 %vm2552_vm0, %v2553_v3  ;;  %2042 = vmatprep.mubr.msk.f32.mxu1 %vm2552_vm0, %v2553_v3  ;;  %v2639_v10 = vld [vmem:[%s3304_s1] ss:$0 sm:$0xff]  ;;  %v2680_v25 = vsel %vm96_vm1, %v91_v13, 0  ;;  %vm879_vm14 = vcmask 1043456   ;;  %s2556_s1 = smov [#allocation8]  }
  0x3a   :  { %v2788_v62 = vand.u32 4294901760, %v2680_v25  ;;  %s1630_s26 = sshll.u32 %s2556_s1, 4  ;;  %s1631_s26 = int_to_ptr.vmem [resolvable:$true] %s1630_s26 }
  0x3b   :  { %v59_v4 = vadd.s32 8, %v58_v2  ;;  %v60_v5 = vadd.s32 16, %v58_v2  ;;  %v61_v6 = vadd.s32 24, %v58_v2  ;;  %v2630_v7 = vadd.s32 32, %v58_v2  ;;  %s2518_s28 = scalar_lea.vmem %s1631_s26, 64  ;;  %p2523_p11 = scmp.lt.s32.totalorder %s1631_s26, %s1631_s26 }
  0x3c   :  { %v2632_v8 = vadd.s32 40, %v58_v2  ;;  %v2641_v11 = vadd.s32 48, %v58_v2  ;;  %v2643_v12 = vadd.s32 56, %v58_v2  ;;  %vm70_vm2 = vcmp.eq.s32.totalorder %v58_v2, %v2634_v9  ;;  %p2519_p10 = scmp.ne.s32.totalorder %s1631_s26, %s2518_s28  ;;  %p2524_p12 = scmp.lt.s32.totalorder %s2518_s28, %s2518_s28 }
  0x3d   :  { %vm71_vm3 = vcmp.eq.s32.totalorder %v59_v4, %v2634_v9  ;;  %vm834_vm4 = vcmp.eq.s32.totalorder %v58_v2, %v2639_v10  ;;  %vm835_vm5 = vcmp.eq.s32.totalorder %v59_v4, %v2639_v10  ;;  %v1641_v14 = vsel %vm70_vm2, 1.0, %v2553_v3 }
  0x3e   :  { %v1642_v15 = vsel %vm71_vm3, 1.0, %v2553_v3  ;;  %vm2651_vm6 = vmpackc.low %vm71_vm3, %vm70_vm2  ;;  %v1670_v17 = vsel %vm834_vm4, 1.0, %v2553_v3  ;;  %v1671_v18 = vsel %vm835_vm5, 1.0, %v2553_v3  ;;  %v2660_v20 = vsub.f32 %v1641_v14, %v1641_v14  ;;  %p2525_p13 = por %p2524_p12, %p2523_p11 }
  0x3f   :  { %2214 = vmatpush3.bf16.msk.msra.mxu0 %vm2651_vm6, %v3309_v19  ;;  %v2662_v21 = vsub.f32 %v1642_v15, %v1642_v15  ;;  %vm2664_vm7 = vmpackc.low %vm835_vm5, %vm834_vm4  ;;  %v2668_v23 = vsub.f32 %v1670_v17, %v1670_v17  ;;  %v2670_v24 = vsub.f32 %v1671_v18, %v1671_v18  ;;  %vm72_vm8 = vcmp.eq.s32.totalorder %v60_v5, %v2634_v9  ;;  %v859_v18 = vld [vmem:[#allocation7 + $0x8] sm:$0xff] }
  0x40   :  { %2268 = vmatpush3.bf16.msk.msra.mxu1 %vm2664_vm7, %v3309_v19  ;;  %2215 = vmatprep.subr.bf16.mxu0 %v3330_v1  ;;  %vm73_vm9 = vcmp.eq.s32.totalorder %v61_v6, %v2634_v9  ;;  %vm836_vm10 = vcmp.eq.s32.totalorder %v60_v5, %v2639_v10  ;;  %v241_v26 = vand.u32 4294901760, %v2660_v20  ;;  %v1643_v31 = vsel %vm72_vm8, 1.0, %v2553_v3  ;;  %v858_v5 = vld [vmem:[#allocation7] sm:$0xff]  ;;  %p2526_p0 = pnand %p2525_p13, %p2519_p10 }
  0x41   :  { %v3321_v27 = vand.u32 4294901760, %v2662_v21  ;;  %v3318_v28 = vand.u32 4294901760, %v2668_v23  ;;  %v3317_v29 = vand.u32 4294901760, %v2670_v24  ;;  %2269 = vmatprep.subr.bf16.mxu1 %v3330_v1  ;;  %vm2687_vm11 = vmpackc.low %vm73_vm9, %vm72_vm8  ;;  %v1644_v32 = vsel %vm73_vm9, 1.0, %v2553_v3 }
  0x42   :  { %vm837_vm12 = vcmp.eq.s32.totalorder %v61_v6, %v2639_v10  ;;  %v1672_v33 = vsel %vm836_vm10, 1.0, %v2553_v3  ;;  %v2700_v34 = vsub.f32 %v2660_v20, %v241_v26  ;;  %vm863_vm2 = vcmask 490496  }
  0x43   :  { %v2705_v35 = vsub.f32 %v2662_v21, %v3321_v27  ;;  %v2710_v36 = vsub.f32 %v2668_v23, %v3318_v28  ;;  %v2715_v37 = vsub.f32 %v2670_v24, %v3317_v29  ;;  %2217 = vmatpush3.bf16.msk.msra.mxu0 %vm2687_vm11, %v3309_v19  ;;  %vm2722_vm15 = vmpackc.low %vm837_vm12, %vm836_vm10  ;;  %v2726_v39 = vsub.f32 %v1643_v31, %v1643_v31  ;;  %v93_v31 = vld [vmem:[#allocation5 + $0x10] sm:$0xff]  ;;  %v861_v28 = vld [vmem:[#allocation7 + $0x18] sm:$0xff] }
  0x44   :  { %v2728_v40 = vsub.f32 %v1644_v32, %v1644_v32  ;;  %v1673_v41 = vsel %vm837_vm12, 1.0, %v2553_v3  ;;  %2271 = vmatpush3.bf16.msk.msra.mxu1 %vm2722_vm15, %v3309_v19  ;;  %v2734_v42 = vsub.f32 %v1672_v33, %v1672_v33  ;;  %2218 = vmatprep.subr.bf16.mxu0 %v3330_v1  ;;  %v243_v43 = vand.u32 4294901760, %v2700_v34 }
  0x45   :  { %v250_v44 = vand.u32 4294901760, %v2705_v35  ;;  %v1011_v45 = vand.u32 4294901760, %v2710_v36  ;;  %v1018_v46 = vand.u32 4294901760, %v2715_v37  ;;  %2272 = vmatprep.subr.bf16.mxu1 %v3330_v1  ;;  %v3313_v47 = vand.u32 4294901760, %v2726_v39 }
  0x46   :  { %v3311_v48 = vand.u32 4294901760, %v2728_v40  ;;  %v3312_v49 = vand.u32 4294901760, %v2734_v42  ;;  %v2745_v50 = vsub.f32 %v1673_v41, %v1673_v41  ;;  %vm74_vm3 = vcmp.eq.s32.totalorder %v2630_v7, %v2634_v9 }
  0x47   :  { %vm75_vm4 = vcmp.eq.s32.totalorder %v2632_v8, %v2634_v9  ;;  %vm838_vm5 = vcmp.eq.s32.totalorder %v2630_v7, %v2639_v10  ;;  %vm839_vm8 = vcmp.eq.s32.totalorder %v2632_v8, %v2639_v10  ;;  %v1645_v52 = vsel %vm74_vm3, 1.0, %v2553_v3 }
  0x48   :  { %v3315_v51 = vand.u32 4294901760, %v2745_v50  ;;  %v1646_v53 = vsel %vm75_vm4, 1.0, %v2553_v3  ;;  %vm2758_vm9 = vmpackc.low %vm75_vm4, %vm74_vm3  ;;  %v1674_v55 = vsel %vm838_vm5, 1.0, %v2553_v3  ;;  %v2766_v56 = vsub.f32 %v1645_v52, %v1645_v52 }
  0x49   :  { %2220 = vmatpush3.bf16.msk.msra.mxu0 %vm2758_vm9, %v3309_v19  ;;  %v2768_v57 = vsub.f32 %v1646_v53, %v1646_v53  ;;  %v1675_v58 = vsel %vm839_vm8, 1.0, %v2553_v3  ;;  %vm2771_vm10 = vmpackc.low %vm839_vm8, %vm838_vm5  ;;  %v2775_v60 = vsub.f32 %v1674_v55, %v1674_v55  ;;  %vm76_vm12 = vcmp.eq.s32.totalorder %v2641_v11, %v2634_v9  ;;  %v92_v9 = vld [vmem:[#allocation5 + $0x8] sm:$0xff] }
  0x4a   :  { %2274 = vmatpush3.bf16.msk.msra.mxu1 %vm2771_vm10, %v3309_v19  ;;  %v2780_v61 = vsub.f32 %v1675_v58, %v1675_v58  ;;  %1864 = vmatprep.subr.mxu0 %v2553_v3  ;;  %vm840_vm3 = vcmp.eq.s32.totalorder %v2641_v11, %v2639_v10  ;;  %v269_v63 = vand.u32 4294901760, %v2766_v56  ;;  %v2795_v4 = vsel %vm76_vm12, 1.0, %v2553_v3 }
  0x4b   :  { %v3324_v0 = vand.u32 4294901760, %v2768_v57  ;;  %v3322_v2 = vand.u32 4294901760, %v2775_v60  ;;  %2275 = vmatprep.subr.bf16.mxu1 %v3330_v1  ;;  %v114_v7 = vsel %vm112_vm13, %v2795_v4, 0  ;;  %vm841_vm4 = vcmp.eq.s32.totalorder %v2643_v12, %v2639_v10  ;;  %vm2815_vm5 = vmpackc.low %vm879_vm14, %vm840_vm3 }
  0x4c   :  { %v3323_v6 = vand.u32 4294901760, %v2780_v61  ;;  %v1676_v8 = vsel %vm840_vm3, 1.0, %v2553_v3  ;;  %v2808_v13 = vsub.f32 %v114_v7, %v114_v7  ;;  %v1677_v14 = vsel %vm841_vm4, 1.0, %v2553_v3 }
  0x4d   :  { %1865 = vmatpush3.msk.msra.mxu0 %vm112_vm13, %v2795_v4  ;;  %v2819_v12 = vsub.f32 %v1676_v8, %v1676_v8  ;;  %v2823_v17 = vsub.f32 %v2680_v25, %v2788_v62  ;;  %v881_v32 = vsel %vm879_vm14, %v1677_v14, 0  ;;  %v2555_v33 = vmov 1.0  }
  0x4e   :  { %v2826_v34 = vpack.c.bf16 %v1677_v14, %v2555_v33  ;;  %2221 = vmatprep.subr.bf16.mxu0 %v3330_v1  ;;  %v865_v10 = vsel %vm863_vm2, %v858_v5, 0  ;;  %v2222_v11 = vpack.c.bf16 %v250_v44, %v243_v43  ;;  %v2831_v36 = vsub.f32 %v881_v32, %v881_v32  ;;  %v860_v32 = vld [vmem:[#allocation7 + $0x10] sm:$0xff] }
  0x4f   :  { %v1051_v35 = vand.u32 4294901760, %v2819_v12  ;;  %v3308_v37 = vand.u32 4294901760, %v2823_v17  ;;  %v2834_v25 = vand.u32 4294901760, %v865_v10  ;;  %v2280_v41 = vpack.c.bf16 %v1018_v46, %v1011_v45 }
  0x50   :  { %2278 = vmatpush3.bf16.msk.msra.mxu1 %vm2815_vm5, %v2826_v34  ;;  %v101_v52 = vsel %vm96_vm1, %v92_v9, 0  ;;  %v868_v53 = vsel %vm863_vm2, %v859_v18, 0  ;;  %v104_v55 = vsel %vm96_vm1, %v93_v31, 0  ;;  %v1058_v43 = vand.u32 4294901760, %v2831_v36 }
  0x51   :  { %v191_v44 = vsub.f32 %v2823_v17, %v3308_v37  ;;  %v2847_v58 = vsub.f32 %v865_v10, %v2834_v25  ;;  %2279 = vmatprep.subr.bf16.mxu1 %v3330_v1  ;;  %v2850_v5 = vand.u32 4294901760, %v101_v52  ;;  %v2852_v45 = vand.u32 4294901760, %v868_v53 }
  0x52   :  { %v2854_v46 = vand.u32 4294901760, %v104_v55  ;;  %v256_v7 = vsub.f32 %v2726_v39, %v3313_v47  ;;  %v263_v8 = vsub.f32 %v2728_v40, %v3311_v48  ;;  %v1024_v31 = vsub.f32 %v2734_v42, %v3312_v49  ;;  %v94_v47 = vld [vmem:[#allocation5 + $0x18] sm:$0xff] }
  0x53   :  { %v192_v9 = vand.u32 4294901760, %v191_v44  ;;  %v3314_v14 = vand.u32 4294901760, %v2847_v58  ;;  %v2864_v18 = vsub.f32 %v101_v52, %v2850_v5  ;;  %v2870_v33 = vsub.f32 %v868_v53, %v2852_v45 }
  0x54   :  { %v2873_v10 = vsub.f32 %v104_v55, %v2854_v46  ;;  %v257_v37 = vand.u32 4294901760, %v256_v7  ;;  %v264_v19 = vand.u32 4294901760, %v263_v8  ;;  %v1025_v48 = vand.u32 4294901760, %v1024_v31 }
  0x55   :  { %1867 = vmatmul.mubr.f32.vlgmr.msra.gmra.mrb[0].mxu0 %v192_v9  ;;  %v959_v44 = vsub.f32 %v2847_v58, %v3314_v14  ;;  %v3316_v52 = vand.u32 4294901760, %v2864_v18  ;;  %v1031_v49 = vsub.f32 %v2745_v50, %v3315_v51  ;;  %v3319_v53 = vand.u32 4294901760, %v2870_v33 }
  0x56   :  { %1869 = vmatprep.mubr.msk.f32.mxu0 %vm2552_vm0, %v2553_v3  ;;  %2223 = vmatpush3.bf16.msra.mxu0 %v2222_v11  ;;  %v3320_v55 = vand.u32 4294901760, %v2873_v10  ;;  %v2225_v7 = vpack.c.bf16 %v264_v19, %v257_v37  ;;  %v871_v8 = vsel %vm863_vm2, %v860_v32, 0  ;;  %v107_v37 = vsel %vm96_vm1, %v94_v47, 0 }
  0x57   :  { %v960_v9 = vand.u32 4294901760, %v959_v44  ;;  %v201_v31 = vsub.f32 %v2864_v18, %v3316_v52  ;;  %2224 = vmatprep.subr.bf16.mxu0 %v3330_v1  ;;  %v1032_v14 = vand.u32 4294901760, %v1031_v49  ;;  %v2891_v51 = vand.u32 4294901760, %v871_v8 }
  0x58   :  { %v969_v11 = vsub.f32 %v2870_v33, %v3319_v53  ;;  %v211_v19 = vsub.f32 %v2873_v10, %v3320_v55  ;;  %v270_v32 = vsub.f32 %v2766_v56, %v269_v63  ;;  %v2906_v29 = vand.u32 4294901760, %v107_v37  ;;  %v95_v53 = vld [vmem:[#allocation5 + $0x20] sm:$0xff] }
  0x59   :  { %2043 = vmatmul.mubr.f32.vlgmr.msra.gmra.mrb[0].mxu1 %v960_v9  ;;  %v202_v44 = vand.u32 4294901760, %v201_v31  ;;  %v2283_v52 = vpack.c.bf16 %v1032_v14, %v1025_v48  ;;  %v2904_v49 = vsub.f32 %v871_v8, %v2891_v51  ;;  %v277_v9 = vsub.f32 %v2768_v57, %v3324_v0 }
  0x5a   :  { %2281 = vmatpush3.bf16.msra.mxu1 %v2280_v41  ;;  %2045 = vmatprep.mubr.msk.f32.mxu1 %vm2552_vm0, %v2553_v3  ;;  %v970_v55 = vand.u32 4294901760, %v969_v11  ;;  %v212_v47 = vand.u32 4294901760, %v211_v19  ;;  %v271_v27 = vand.u32 4294901760, %v270_v32  ;;  %v2916_v14 = vsub.f32 %v107_v37, %v2906_v29  ;;  %v862_v32 = vld [vmem:[#allocation7 + $0x20] sm:$0xff] }
  0x5b   :  { %1870 = vmatmul.mubr.f32.gmra.mrb[2].mxu0 %v202_v44  ;;  %2282 = vmatprep.subr.bf16.mxu1 %v3330_v1  ;;  %v3329_v48 = vand.u32 4294901760, %v2904_v49  ;;  %v1038_v41 = vsub.f32 %v2775_v60, %v3322_v2  ;;  %v1045_v8 = vsub.f32 %v2780_v61, %v3323_v6  ;;  %v278_v31 = vand.u32 4294901760, %v277_v9 }
  0x5c   :  { %1872 = vmatprep.mubr.msk.f32.mxu0 %vm2552_vm0, %v2553_v3  ;;  %2226 = vmatpush3.bf16.msra.mxu0 %v2225_v7  ;;  %v874_v11 = vsel %vm863_vm2, %v861_v28, 0  ;;  %v110_v19 = vsel %vm96_vm1, %v95_v53, 0  ;;  %v3325_v37 = vand.u32 4294901760, %v2808_v13  ;;  %v3327_v2 = vand.u32 4294901760, %v2916_v14 }
  0x5d   :  { %2046 = vmatmul.mubr.f32.gmra.mrb[2].mxu1 %v970_v55  ;;  %v979_v44 = vsub.f32 %v2904_v49, %v3329_v48  ;;  %2227 = vmatprep.subr.bf16.mxu0 %v3330_v1  ;;  %v1039_v6 = vand.u32 4294901760, %v1038_v41  ;;  %v1046_v0 = vand.u32 4294901760, %v1045_v8  ;;  %v2228_v28 = vpack.c.bf16 %v278_v31, %v271_v27 }
  0x5e   :  { %2284 = vmatpush3.bf16.msra.mxu1 %v2283_v52  ;;  %2048 = vmatprep.mubr.msk.f32.mxu1 %vm2552_vm0, %v2553_v3  ;;  %v2936_v53 = vand.u32 4294901760, %v874_v11  ;;  %v2938_v7 = vand.u32 4294901760, %v110_v19  ;;  %v284_v55 = vsub.f32 %v2808_v13, %v3325_v37  ;;  %v221_v41 = vsub.f32 %v2916_v14, %v3327_v2 }
  0x5f   :  { %1873 = vmatmul.mubr.f32.gmra.mrb[4].mxu0 %v212_v47  ;;  %v980_v9 = vand.u32 4294901760, %v979_v44  ;;  %2285 = vmatprep.subr.bf16.mxu1 %v3330_v1  ;;  %v2286_v52 = vpack.c.bf16 %v1046_v0, %v1039_v6  ;;  %v877_v8 = vsel %vm863_vm2, %v862_v32, 0  ;;  %v1052_v0 = vsub.f32 %v2819_v12, %v1051_v35 }
  0x60   :  { %1875 = vmatprep.mubr.msk.f32.mxu0 %vm2552_vm0, %v2553_v3  ;;  %2229 = vmatpush3.bf16.msra.mxu0 %v2228_v28  ;;  %v2951_v27 = vsub.f32 %v874_v11, %v2936_v53  ;;  %v2954_v31 = vsub.f32 %v110_v19, %v2938_v7  ;;  %v285_v47 = vand.u32 4294901760, %v284_v55  ;;  %v2956_v44 = vand.u32 4294901760, %v877_v8 }
  0x61   :  { %2049 = vmatmul.mubr.f32.gmra.mrb[4].mxu1 %v980_v9  ;;  %v222_v37 = vand.u32 4294901760, %v221_v41  ;;  %1893 = vmatprep.subr.mxu0 %v2553_v3  ;;  %v1059_v6 = vsub.f32 %v2831_v36, %v1058_v43  ;;  %v1053_v28 = vand.u32 4294901760, %v1052_v0 }
  0x62   :  { %2051 = vmatprep.mubr.msk.f32.mxu1 %vm2552_vm0, %v2553_v3  ;;  %2287 = vmatpush3.bf16.msra.mxu1 %v2286_v52  ;;  %v3326_v11 = vand.u32 4294901760, %v2951_v27  ;;  %v3328_v19 = vand.u32 4294901760, %v2954_v31  ;;  %v2970_v32 = vsub.f32 %v877_v8, %v2956_v44 }
  0x63   :  { %1876 = vmatmul.mubr.f32.gmra.mrb[6].mxu0 %v222_v37  ;;  %2288 = vmatprep.subr.bf16.mxu1 %v3330_v1  ;;  %v1060_v55 = vand.u32 4294901760, %v1059_v6  ;;  %v3347_v37 = vand.u32 4294901760, %v2662_v21 }
  0x64   :  { %v989_v9 = vsub.f32 %v2951_v27, %v3326_v11  ;;  %1878 = vmatprep.mubr.msk.f32.mxu0 %vm2552_vm0, %v2553_v3  ;;  %v231_v41 = vsub.f32 %v2954_v31, %v3328_v19  ;;  %1894 = vmatpush3.msra.mxu0 %v285_v47  ;;  %v3332_v52 = vand.u32 4294901760, %v2970_v32  ;;  %v3348_v19 = vand.u32 4294901760, %v2668_v23 }
  0x65   :  { %v2289_v8 = vpack.c.bf16 %v1060_v55, %v1053_v28  ;;  %2230 = vmatprep.subr.bf16.mxu0 %v3330_v1  ;;  %v2987_v0 = vpack.c.bf16 %v3347_v37, %v241_v26  ;;  %v3349_v47 = vand.u32 4294901760, %v2670_v24  ;;  %v3350_v28 = vand.u32 4294901760, %v2726_v39 }
  0x66   :  { %v990_v6 = vand.u32 4294901760, %v989_v9  ;;  %v232_v11 = vand.u32 4294901760, %v231_v41  ;;  %v999_v2 = vsub.f32 %v2970_v32, %v3332_v52  ;;  %v3351_v55 = vand.u32 4294901760, %v2728_v40 }
  0x67   :  { %v2996_v48 = vpack.c.bf16 %v3349_v47, %v3348_v19  ;;  %2290 = vmatpush3.bf16.msra.mxu1 %v2289_v8  ;;  %v3352_v26 = vand.u32 4294901760, %v2734_v42  ;;  %v3353_v9 = vand.u32 4294901760, %v2745_v50  ;;  %v3354_v37 = vand.u32 4294901760, %v2768_v57 }
  0x68   :  { %v3002_v1 = vpack.c.bf16 %v3351_v55, %v3350_v28  ;;  %v3355_v19 = vand.u32 4294901760, %v2775_v60  ;;  %v3356_v8 = vand.u32 4294901760, %v2780_v61  ;;  %2052 = vmatmul.mubr.f32.gmra.mrb[6].mxu1 %v990_v6  ;;  %1879 = vmatmul.mubr.f32.gmra.mrb[8].mxu0 %v232_v11  ;;  %v1000_v28 = vand.u32 4294901760, %v999_v2 }
  0x69   :  { %v3008_v41 = vpack.c.bf16 %v3353_v9, %v3352_v26  ;;  %v3014_v52 = vpack.c.bf16 %v3354_v37, %v269_v63  ;;  %v3026_v55 = vpack.c.bf16 %v1058_v43, %v1051_v35  ;;  %2054 = vmatprep.mubr.msk.f32.mxu1 %vm2552_vm0, %v2553_v3  ;;  %1895 = vmatprep.mubr.msk.f32.mxu0 %vm2552_vm0, %v2553_v3  ;;  %v3357_v63 = vmov 0.0|0.0  }
  0x6a   :  { %v3020_v47 = vpack.c.bf16 %v3356_v8, %v3355_v19  ;;  %2291 = vmatprep.subr.bf16.mxu1 %v3357_v63  ;;  %v2231_v26 = vpack.c.bf16 %v2662_v21, %v2660_v20  ;;  %v2292_v2 = vpack.c.bf16 %v2670_v24, %v2668_v23  ;;  %v2234_v35 = vpack.c.bf16 %v2728_v40, %v2726_v39 }
  0x6b   :  { %v2295_v20 = vpack.c.bf16 %v2745_v50, %v2734_v42  ;;  %v2237_v21 = vpack.c.bf16 %v2768_v57, %v2766_v56  ;;  %v2298_v23 = vpack.c.bf16 %v2780_v61, %v2775_v60  ;;  %v2301_v24 = vpack.c.bf16 %v2831_v36, %v2819_v12 }
  0x6c   :  { %2055 = vmatmul.mubr.f32.gmra.mrb[8].mxu1 %v1000_v28  ;;  %1896 = vmatmul.mubr.f32.vlgmr.msra.gmra.mrb[0].mxu0 %v2788_v62  ;;  %v3358_v39 = vmov 1.0|1.0   ;;  %v3359_v40 = vand.u32 4294901760, %v2823_v17  ;;  %v3360_v42 = vand.u32 4294901760, %v2847_v58  ;;  %v3361_v50 = vand.u32 4294901760, %v2864_v18 }
  0x6d   :  { %2073 = vmatprep.mubr.msk.f32.mxu1 %vm2552_vm0, %v2553_v3  ;;  %1898 = vmatprep.mubr.msk.f32.mxu0 %vm2552_vm0, %v2553_v3  ;;  %v3362_v56 = vand.u32 4294901760, %v2870_v33  ;;  %v3363_v57 = vand.u32 4294901760, %v2873_v10  ;;  %v3365_v60 = vand.u32 4294901760, %v2916_v14  ;;  %v3366_v61 = vand.u32 4294901760, %v2808_v13 }
  0x6e   :  { %2232 = vmatpush3.bf16.msra.mxu0 %v2231_v26  ;;  %v3367_v12 = vand.u32 4294901760, %v2951_v27 }
  0x6f   :  { %2233 = vmatprep.subr.bf16.mxu0 %v3357_v63 }
  0x70   :  { %2074 = vmatmul.mubr.f32.vlgmr.msra.gmra.mrb[0].mxu1 %v2834_v25  ;;  %1899 = vmatmul.mubr.f32.gmra.mrb[2].mxu0 %v2850_v5 }
  0x71   :  { %2293 = vmatpush3.bf16.msra.mxu1 %v2292_v2  ;;  %2076 = vmatprep.mubr.msk.f32.mxu1 %vm2552_vm0, %v2553_v3 }
  0x72   :  { %1901 = vmatprep.mubr.msk.f32.mxu0 %vm2552_vm0, %v2553_v3  ;;  %2294 = vmatprep.subr.bf16.mxu1 %v3357_v63 }
  0x73   :  { %2235 = vmatpush3.bf16.msra.mxu0 %v2234_v35 }
  0x74   :  { %2077 = vmatmul.mubr.f32.gmra.mrb[2].mxu1 %v2852_v45  ;;  %1902 = vmatmul.mubr.f32.gmra.mrb[4].mxu0 %v2854_v46 }
  0x75   :  { %2296 = vmatpush3.bf16.msra.mxu1 %v2295_v20  ;;  %2079 = vmatprep.mubr.msk.f32.mxu1 %vm2552_vm0, %v2553_v3 }
  0x76   :  { %1904 = vmatprep.mubr.msk.f32.mxu0 %vm2552_vm0, %v2553_v3  ;;  %2236 = vmatprep.subr.bf16.mxu0 %v3357_v63 }
  0x77   :  { %2297 = vmatprep.subr.bf16.mxu1 %v3357_v63  ;;  %2238 = vmatpush3.bf16.msra.mxu0 %v2237_v21 }
  0x78   :  { %2080 = vmatmul.mubr.f32.gmra.mrb[4].mxu1 %v2891_v51  ;;  %1905 = vmatmul.mubr.f32.gmra.mrb[6].mxu0 %v2906_v29 }
  0x79   :  { %2082 = vmatprep.mubr.msk.f32.mxu1 %vm2552_vm0, %v2553_v3  ;;  %2299 = vmatpush3.bf16.msra.mxu1 %v2298_v23 }
  0x7a   :  { %1907 = vmatprep.mubr.msk.f32.mxu0 %vm2552_vm0, %v2553_v3  ;;  %1922 = vmatprep.subr.mxu0 %v2553_v3 }
  0x7b   :  { %2300 = vmatprep.subr.bf16.mxu1 %v3357_v63  ;;  %1923 = vmatpush3.msra.mxu0 %v2808_v13  ;;  %v3369_v13 = vand.u32 4294901760, %v2970_v32 }
  0x7c   :  { %2083 = vmatmul.mubr.f32.gmra.mrb[6].mxu1 %v2936_v53  ;;  %1908 = vmatmul.mubr.f32.gmra.mrb[8].mxu0 %v2938_v7 }
  0x7d   :  { %2085 = vmatprep.mubr.msk.f32.mxu1 %vm2552_vm0, %v2553_v3  ;;  %2302 = vmatpush3.bf16.msra.mxu1 %v2301_v24 }
  0x7e   :  { %1924 = vmatprep.mubr.msk.f32.mxu0 %vm2552_vm0, %v2553_v3  ;;  %2239 = vmatprep.subr.bf16.mxu0 %v3357_v63 }
  0x7f   :  { %2303 = vmatprep.subr.bf16.mxu1 %v3357_v63 }
  0x80   :  { %2086 = vmatmul.mubr.f32.gmra.mrb[8].mxu1 %v2956_v44  ;;  %1925 = vmatmul.mubr.f32.vlgmr.msra.gmra.mrb[0].mxu0 %v2823_v17  ;;  %v3368_v17 = vand.u32 4294901760, %v2954_v31 }
  0x81   :  { %2104 = vmatprep.mubr.msk.f32.mxu1 %vm2552_vm0, %v2553_v3  ;;  %1927 = vmatprep.mubr.msk.f32.mxu0 %vm2552_vm0, %v2553_v3 }
  0x82   :  { %2241 = vmatpush3.bf16.msk.msra.mxu0 %vm2651_vm6, %v3358_v39 }
  0x83   :  { %2242 = vmatprep.subr.bf16.mxu0 %v3357_v63 }
  0x84   :  { %2105 = vmatmul.mubr.f32.vlgmr.msra.gmra.mrb[0].mxu1 %v2847_v58  ;;  %1928 = vmatmul.mubr.f32.gmra.mrb[2].mxu0 %v2864_v18 }
  0x85   :  { %2305 = vmatpush3.bf16.msk.msra.mxu1 %vm2664_vm7, %v3358_v39  ;;  %2107 = vmatprep.mubr.msk.f32.mxu1 %vm2552_vm0, %v2553_v3 }
  0x86   :  { %1930 = vmatprep.mubr.msk.f32.mxu0 %vm2552_vm0, %v2553_v3  ;;  %2306 = vmatprep.subr.bf16.mxu1 %v3357_v63 }
  0x87   :  { %2244 = vmatpush3.bf16.msk.msra.mxu0 %vm2687_vm11, %v3358_v39 }
  0x88   :  { %2108 = vmatmul.mubr.f32.gmra.mrb[2].mxu1 %v2870_v33  ;;  %1931 = vmatmul.mubr.f32.gmra.mrb[4].mxu0 %v2873_v10 }
  0x89   :  { %2308 = vmatpush3.bf16.msk.msra.mxu1 %vm2722_vm15, %v3358_v39  ;;  %2110 = vmatprep.mubr.msk.f32.mxu1 %vm2552_vm0, %v2553_v3 }
  0x8a   :  { %1933 = vmatprep.mubr.msk.f32.mxu0 %vm2552_vm0, %v2553_v3  ;;  %2245 = vmatprep.subr.bf16.mxu0 %v3357_v63 }
  0x8b   :  { %2309 = vmatprep.subr.bf16.mxu1 %v3357_v63  ;;  %2247 = vmatpush3.bf16.msk.msra.mxu0 %vm2758_vm9, %v3358_v39 }
  0x8c   :  { %2111 = vmatmul.mubr.f32.gmra.mrb[4].mxu1 %v2904_v49  ;;  %1934 = vmatmul.mubr.f32.gmra.mrb[6].mxu0 %v2916_v14 }
  0x8d   :  { %2113 = vmatprep.mubr.msk.f32.mxu1 %vm2552_vm0, %v2553_v3  ;;  %2311 = vmatpush3.bf16.msk.msra.mxu1 %vm2771_vm10, %v3358_v39 }
  0x8e   :  { %1936 = vmatprep.mubr.msk.f32.mxu0 %vm2552_vm0, %v2553_v3  ;;  %1951 = vmatprep.subr.mxu0 %v2553_v3 }
  0x8f   :  { %2312 = vmatprep.subr.bf16.mxu1 %v3357_v63  ;;  %1952 = vmatpush3.msk.msra.mxu0 %vm112_vm13, %v2795_v4 }
  0x90   :  { %2114 = vmatmul.mubr.f32.gmra.mrb[6].mxu1 %v2951_v27  ;;  %1937 = vmatmul.mubr.f32.gmra.mrb[8].mxu0 %v2954_v31 }
  0x91   :  { %2116 = vmatprep.mubr.msk.f32.mxu1 %vm2552_vm0, %v2553_v3  ;;  %2315 = vmatpush3.bf16.msk.msra.mxu1 %vm2815_vm5, %v2826_v34 }
  0x92   :  { %1953 = vmatprep.mubr.msk.f32.mxu0 %vm2552_vm0, %v2553_v3  ;;  %2248 = vmatprep.subr.bf16.mxu0 %v3357_v63 }
  0x93   :  { %2316 = vmatprep.subr.bf16.mxu1 %v3357_v63 }
  0x94   :  { %2117 = vmatmul.mubr.f32.gmra.mrb[8].mxu1 %v2970_v32  ;;  %1954 = vmatmul.mubr.f32.vlgmr.msra.gmra.mrb[0].mxu0 %v3359_v40 }
  0x95   :  { %2135 = vmatprep.mubr.msk.f32.mxu1 %vm2552_vm0, %v2553_v3  ;;  %1956 = vmatprep.mubr.msk.f32.mxu0 %vm2552_vm0, %v2553_v3 }
  0x96   :  { %2250 = vmatpush3.bf16.msra.mxu0 %v2987_v0 }
  0x97   :  { %2251 = vmatprep.subr.bf16.mxu0 %v3357_v63 }
  0x98   :  { %2136 = vmatmul.mubr.f32.vlgmr.msra.gmra.mrb[0].mxu1 %v3360_v42  ;;  %1957 = vmatmul.mubr.f32.gmra.mrb[2].mxu0 %v3361_v50 }
  0x99   :  { %2318 = vmatpush3.bf16.msra.mxu1 %v2996_v48  ;;  %2138 = vmatprep.mubr.msk.f32.mxu1 %vm2552_vm0, %v2553_v3 }
  0x9a   :  { %1959 = vmatprep.mubr.msk.f32.mxu0 %vm2552_vm0, %v2553_v3  ;;  %2319 = vmatprep.subr.bf16.mxu1 %v3357_v63 }
  0x9b   :  { %2253 = vmatpush3.bf16.msra.mxu0 %v3002_v1  ;;  %v3364_v1 = vand.u32 4294901760, %v2904_v49 }
  0x9c   :  { %2139 = vmatmul.mubr.f32.gmra.mrb[2].mxu1 %v3362_v56  ;;  %1960 = vmatmul.mubr.f32.gmra.mrb[4].mxu0 %v3363_v57 }
  0x9d   :  { %2321 = vmatpush3.bf16.msra.mxu1 %v3008_v41  ;;  %2141 = vmatprep.mubr.msk.f32.mxu1 %vm2552_vm0, %v2553_v3 }
  0x9e   :  { %1962 = vmatprep.mubr.msk.f32.mxu0 %vm2552_vm0, %v2553_v3  ;;  %2254 = vmatprep.subr.bf16.mxu0 %v3357_v63 }
  0x9f   :  { %2322 = vmatprep.subr.bf16.mxu1 %v3357_v63  ;;  %2256 = vmatpush3.bf16.msra.mxu0 %v3014_v52 }
  0xa0   :  { %2142 = vmatmul.mubr.f32.gmra.mrb[4].mxu1 %v3364_v1  ;;  %1963 = vmatmul.mubr.f32.gmra.mrb[6].mxu0 %v3365_v60 }
  0xa1   :  { %2144 = vmatprep.mubr.msk.f32.mxu1 %vm2552_vm0, %v2553_v3  ;;  %2324 = vmatpush3.bf16.msra.mxu1 %v3020_v47 }
  0xa2   :  { %1965 = vmatprep.mubr.msk.f32.mxu0 %vm2552_vm0, %v2553_v3  ;;  %1980 = vmatprep.subr.mxu0 %v2553_v3 }
  0xa3   :  { %2325 = vmatprep.subr.bf16.mxu1 %v3357_v63  ;;  %1981 = vmatpush3.msra.mxu0 %v3366_v61 }
  0xa4   :  { %2145 = vmatmul.mubr.f32.gmra.mrb[6].mxu1 %v3367_v12  ;;  %1966 = vmatmul.mubr.f32.gmra.mrb[8].mxu0 %v3368_v17 }
  0xa5   :  { %2147 = vmatprep.mubr.msk.f32.mxu1 %vm2552_vm0, %v2553_v3  ;;  %2327 = vmatpush3.bf16.msra.mxu1 %v3026_v55 }
  0xa6   :  { %1982 = vmatprep.mubr.msk.f32.mxu0 %vm2552_vm0, %v2553_v3  ;;  %2257 = vmatprep.subr.bf16.mxu0 %v3357_v63 }
  0xa7   :  { %2328 = vmatprep.subr.bf16.mxu1 %v3357_v63 }
  0xa8   :  { %2148 = vmatmul.mubr.f32.gmra.mrb[8].mxu1 %v3369_v13  ;;  %1983 = vmatmul.mubr.f32.vlgmr.msra.gmra.mrb[0].mxu0 %v2788_v62 }
  0xa9   :  { %2166 = vmatprep.mubr.msk.f32.mxu1 %vm2552_vm0, %v2553_v3  ;;  %1985 = vmatprep.mubr.msk.f32.mxu0 %vm2552_vm0, %v2553_v3 }
  0xaa   :  { %2259 = vmatpush3.bf16.msk.msra.mxu0 %vm2651_vm6, %v3358_v39 }
  0xab   :  { %2260 = vmatprep.subr.bf16.mxu0 %v3357_v63 }
  0xac   :  { %2167 = vmatmul.mubr.f32.vlgmr.msra.gmra.mrb[0].mxu1 %v2834_v25  ;;  %1986 = vmatmul.mubr.f32.gmra.mrb[2].mxu0 %v2850_v5 }
  0xad   :  { %2330 = vmatpush3.bf16.msk.msra.mxu1 %vm2664_vm7, %v3358_v39  ;;  %2169 = vmatprep.mubr.msk.f32.mxu1 %vm2552_vm0, %v2553_v3 }
  0xae   :  { %1988 = vmatprep.mubr.msk.f32.mxu0 %vm2552_vm0, %v2553_v3  ;;  %2331 = vmatprep.subr.bf16.mxu1 %v3357_v63 }
  0xaf   :  { %2262 = vmatpush3.bf16.msk.msra.mxu0 %vm2687_vm11, %v3358_v39 }
  0xb0   :  { %2170 = vmatmul.mubr.f32.gmra.mrb[2].mxu1 %v2852_v45  ;;  %1989 = vmatmul.mubr.f32.gmra.mrb[4].mxu0 %v2854_v46 }
  0xb1   :  { %2333 = vmatpush3.bf16.msk.msra.mxu1 %vm2722_vm15, %v3358_v39  ;;  %2172 = vmatprep.mubr.msk.f32.mxu1 %vm2552_vm0, %v2553_v3 }
  0xb2   :  { %1991 = vmatprep.mubr.msk.f32.mxu0 %vm2552_vm0, %v2553_v3  ;;  %2263 = vmatprep.subr.bf16.mxu0 %v3357_v63 }
  0xb3   :  { %2334 = vmatprep.subr.bf16.mxu1 %v3357_v63  ;;  %2265 = vmatpush3.bf16.msk.msra.mxu0 %vm2758_vm9, %v3358_v39 }
  0xb4   :  { %2173 = vmatmul.mubr.f32.gmra.mrb[4].mxu1 %v2891_v51  ;;  %1992 = vmatmul.mubr.f32.gmra.mrb[6].mxu0 %v2906_v29 }
  0xb5   :  { %2175 = vmatprep.mubr.msk.f32.mxu1 %vm2552_vm0, %v2553_v3  ;;  %2336 = vmatpush3.bf16.msk.msra.mxu1 %vm2771_vm10, %v3358_v39 }
  0xb6   :  { %1994 = vmatprep.mubr.msk.f32.mxu0 %vm2552_vm0, %v2553_v3  ;;  %2009 = vmatprep.subr.mxu0 %v2553_v3 }
  0xb7   :  { %2337 = vmatprep.subr.bf16.mxu1 %v3357_v63  ;;  %2010 = vmatpush3.msk.msra.mxu0 %vm112_vm13, %v2795_v4 }
  0xb8   :  { %2176 = vmatmul.mubr.f32.gmra.mrb[6].mxu1 %v2936_v53  ;;  %1995 = vmatmul.mubr.f32.gmra.mrb[8].mxu0 %v2938_v7 }
  0xb9   :  { %2178 = vmatprep.mubr.msk.f32.mxu1 %vm2552_vm0, %v2553_v3  ;;  %2340 = vmatpush3.bf16.msk.msra.mxu1 %vm2815_vm5, %v2826_v34 }
  0xba   :  { %2011 = vmatprep.mubr.msk.f32.mxu0 %vm2552_vm0, %v2553_v3 }
  0xbc   :  { %2179 = vmatmul.mubr.f32.gmra.mrb[8].mxu1 %v2956_v44  ;;  %2012 = vmatmul.mubr.f32.vlgmr.msra.gmra.mrb[0].mxu0 %v2788_v62 }
  0xbd   :  { %2197 = vmatprep.mubr.msk.f32.mxu1 %vm2552_vm0, %v2553_v3  ;;  %2014 = vmatprep.mubr.msk.f32.mxu0 %vm2552_vm0, %v2553_v3 }
  0xc0   :  { %2198 = vmatmul.mubr.f32.vlgmr.msra.gmra.mrb[0].mxu1 %v2834_v25  ;;  %2015 = vmatmul.mubr.f32.gmra.mrb[2].mxu0 %v2850_v5 }
  0xc1   :  { %2200 = vmatprep.mubr.msk.f32.mxu1 %vm2552_vm0, %v2553_v3  ;;  %2017 = vmatprep.mubr.msk.f32.mxu0 %vm2552_vm0, %v2553_v3 }
  0xc4   :  { %2201 = vmatmul.mubr.f32.gmra.mrb[2].mxu1 %v2852_v45  ;;  %2018 = vmatmul.mubr.f32.gmra.mrb[4].mxu0 %v2854_v46 }
  0xc5   :  { %2203 = vmatprep.mubr.msk.f32.mxu1 %vm2552_vm0, %v2553_v3  ;;  %2020 = vmatprep.mubr.msk.f32.mxu0 %vm2552_vm0, %v2553_v3 }
  0xc8   :  { %2204 = vmatmul.mubr.f32.gmra.mrb[4].mxu1 %v2891_v51  ;;  %2021 = vmatmul.mubr.f32.gmra.mrb[6].mxu0 %v2906_v29 }
  0xc9   :  { %2206 = vmatprep.mubr.msk.f32.mxu1 %vm2552_vm0, %v2553_v3  ;;  %2023 = vmatprep.mubr.msk.f32.mxu0 %vm2552_vm0, %v2553_v3 }
  0xcc   :  { %2207 = vmatmul.mubr.f32.gmra.mrb[6].mxu1 %v2936_v53  ;;  %2024 = vmatmul.mubr.f32.gmra.mrb[8].mxu0 %v2938_v7 }
  0xcd   :  { %2209 = vmatprep.mubr.msk.f32.mxu1 %vm2552_vm0, %v2553_v3 }
  0xd0   :  { %2210 = vmatmul.mubr.f32.gmra.mrb[8].mxu1 %v2956_v44 }
 0x18f   :  { %v784_v16 = vpop.f32.mrb[0].mxu0 }
 0x190   :  { %v2013_v22 = vpop.f32.mrb[1].mxu0  ;;  %v812_v29 = vmul.f32 %v784_v16, %v784_v16 }
 0x193   :  { %v1564_v30 = vpop.f32.mrb[0].mxu1  ;;  %v790_v38 = vpop.f32.mrb[2].mxu0 }
 0x194   :  { %v1608_v51 = vmul.f32 %v1564_v30, %v784_v16  ;;  %v2199_v54 = vpop.f32.mrb[1].mxu1  ;;  %v813_v59 = vmul.f32 %v790_v38, %v790_v38  ;;  %v2016_v62 = vpop.f32.mrb[3].mxu0  ;;  %v1592_v36 = vmul.f32 %v1564_v30, %v1564_v30 }
 0x196   :  { %v817_v4 = vadd.f32 %v813_v59, %v812_v29 }
 0x197   :  { %v1570_v15 = vpop.f32.mrb[2].mxu1  ;;  %v796_v34 = vpop.f32.mrb[4].mxu0 }
 0x198   :  { %v1593_v25 = vmul.f32 %v1570_v15, %v1570_v15  ;;  %v1609_v43 = vmul.f32 %v1570_v15, %v790_v38  ;;  %v2202_v58 = vpop.f32.mrb[3].mxu1  ;;  %v814_v5 = vmul.f32 %v796_v34, %v796_v34  ;;  %v2019_v3 = vpop.f32.mrb[5].mxu0 }
 0x19a   :  { %v1597_v45 = vadd.f32 %v1593_v25, %v1592_v36  ;;  %v1613_v46 = vadd.f32 %v1609_v43, %v1608_v51  ;;  %v818_v18 = vadd.f32 %v817_v4, %v814_v5 }
 0x19b   :  { %v1576_v33 = vpop.f32.mrb[4].mxu1  ;;  %v802_v10 = vpop.f32.mrb[6].mxu0 }
 0x19c   :  { %v1594_v49 = vmul.f32 %v1576_v33, %v1576_v33  ;;  %v1610_v48 = vmul.f32 %v1576_v33, %v796_v34  ;;  %v2205_v14 = vpop.f32.mrb[5].mxu1  ;;  %v815_v53 = vmul.f32 %v802_v10, %v802_v10  ;;  %v2022_v7 = vpop.f32.mrb[7].mxu0 }
 0x19e   :  { %v1598_v27 = vadd.f32 %v1597_v45, %v1594_v49  ;;  %v1614_v31 = vadd.f32 %v1613_v46, %v1610_v48  ;;  %v819_v44 = vadd.f32 %v818_v18, %v815_v53 }
 0x19f   :  { %v1582_v11 = vpop.f32.mrb[6].mxu1  ;;  %v808_v32 = vpop.f32.mrb[8].mxu0 }
 0x1a0   :  { %v1595_v52 = vmul.f32 %v1582_v11, %v1582_v11  ;;  %v1611_v0 = vmul.f32 %v1582_v11, %v802_v10  ;;  %v2208_v6 = vpop.f32.mrb[7].mxu1  ;;  %v816_v9 = vmul.f32 %v808_v32, %v808_v32  ;;  %v2025_v41 = vpop.f32.mrb[9].mxu0 }
 0x1a2   :  { %v1599_v37 = vadd.f32 %v1598_v27, %v1595_v52  ;;  %v1615_v19 = vadd.f32 %v1614_v31, %v1611_v0  ;;  %v820_v8 = vadd.f32 %v819_v44, %v816_v9 }
 0x1a3   :  { %v1588_v47 = vpop.f32.mrb[8].mxu1 }
 0x1a4   :  { %v821_v28 = vrot.slane %v820_v8, 4  ;;  %v1596_v55 = vmul.f32 %v1588_v47, %v1588_v47  ;;  %v1612_v63 = vmul.f32 %v1588_v47, %v808_v32  ;;  %v2211_v26 = vpop.f32.mrb[9].mxu1 }
 0x1a6   :  { %v822_v2 = vadd.f32 %v821_v28, %v820_v8  ;;  %v1600_v35 = vadd.f32 %v1599_v37, %v1596_v55  ;;  %v1616_v20 = vadd.f32 %v1615_v19, %v1612_v63 }
 0x1a8   :  { %v823_v21 = vrot.slane %v822_v2, 2  ;;  %v1601_v23 = vrot.slane %v1600_v35, 4  ;;  %v1617_v24 = vrot.slane %v1616_v20, 4 }
 0x1aa   :  { %v824_v39 = vadd.f32 %v823_v21, %v822_v2  ;;  %v1602_v40 = vadd.f32 %v1601_v23, %v1600_v35  ;;  %v1618_v42 = vadd.f32 %v1617_v24, %v1616_v20 }
 0x1ac   :  { %v1603_v50 = vrot.slane %v1602_v40, 2  ;;  %v1619_v56 = vrot.slane %v1618_v42, 2  ;;  %v825_v57 = vrot.slane %v824_v39, 1 }
 0x1ae   :  { %v1604_v1 = vadd.f32 %v1603_v50, %v1602_v40  ;;  %v1620_v60 = vadd.f32 %v1619_v56, %v1618_v42  ;;  %v826_v61 = vadd.f32 %v825_v57, %v824_v39 }
 0x1b0   :  { %827 = vst [vmem:[#allocation8 + $0x1] sm:$0x1] %v826_v61  ;;  %v1605_v12 = vrot.slane %v1604_v1, 1  ;;  %v1621_v17 = vrot.slane %v1620_v60, 1 }
 0x1b2   :  { %v1606_v13 = vadd.f32 %v1605_v12, %v1604_v1  ;;  %v1622_v16 = vadd.f32 %v1621_v17, %v1620_v60 }
 0x1b4   :  { %1607 = vst [vmem:[#allocation8 + $0x2] sm:$0x1] %v1606_v13  ;;  %1623 = vst [vmem:[#allocation8] sm:$0x1] %v1622_v16 }
 0x1b5   :  { %2529 = shalt.err (!%p2526_p0)
}
 0x1b6   :  { %s2530_s5 = scalar_lea.hbm %s3307_s4, 64 }
 0x1b7   :  { %p2531_p1 = scmp.ne.s32.totalorder %s3307_s4, %s2530_s5  ;;  %p2534_p2 = scmp.lt.u32.totalorder %s2530_s5, %s3307_s4 }
 0x1b9   :  { %p2536_p3 = pnand %p2534_p2, %p2531_p1 }
 0x1bb   :  { %2539 = shalt.err (!%p2536_p3)
}
 0x1bc   :  { %1633 = dma.vmem_to_hbm [thread:$0]  %s1631_s26, 64, %s3307_s4, [#allocation4]  }
 0x1bd   :  { %2544 = dma.done.wait [#allocation4], 64  }
 0x1be   :  { %2545 = vsyncadd [#allocation4], 4294967232 }
 0x1bf   :  { %1637 = vsyncpa [#allocation3], 1 }
 0x1c0   :  { %1638 = vsyncpa [#allocation6], 1 }
 0x1c1   :  { %1639 = vsyncpa [#allocation4], 1 }

// kernel: tpu_custom_call.1
= control target key start
LH: loop header
LB: loop body
LE: loop exit
PB: predicated region body
PF: predicated region fallthrough
CT: control target
= control target key end

     0   :  { %9 = vsyncpa [#allocation3], 0  ;;  %s3303_s0 = inlined_call_operand.hbm [shape: s32[1,128], index: 0, kind: input, shape index: {}]   ;;  %s3304_s1 = inlined_call_operand.vmem [shape: s32[1,128], index: 1, kind: input, shape index: {}]   ;;  %s3305_s2 = inlined_call_operand.hbm [shape: f32[40,50], index: 2, kind: input, shape index: {}]   ;;  %s3306_s3 = inlined_call_operand.hbm [shape: f32[40,60], index: 3, kind: input, shape index: {}]   ;;  %s3307_s4 = inlined_call_operand.hbm [shape: f32[3,128], index: 4, kind: output, shape index: {}]  }
   0x1   :  { %10 = vsyncpa [#allocation6], 0 }
   0x2   :  { %11 = vsyncpa [#allocation4], 0  ;;  %s2546_s15 = smov [#allocation5]   ;;  %s2452_s19 = scalar_lea.hbm %s3305_s2, 640 }
   0x3   :  { %s29_s16 = sshll.u32 %s2546_s15, 4  ;;  %p2453_p0 = scmp.ne.s32.totalorder %s3305_s2, %s2452_s19  ;;  %s30_s16 = int_to_ptr.vmem [resolvable:$true] %s29_s16 }
   0x4   :  { %p2456_p1 = scmp.lt.u32.totalorder %s2452_s19, %s3305_s2 }
   0x6   :  { %p2458_p2 = pnand %p2456_p1, %p2453_p0 }
   0x8   :  { %2461 = shalt.err (!%p2458_p2)
}
   0x9   :  { %s2462_s24 = scalar_lea.vmem %s30_s16, 640  ;;  %p2467_p4 = scmp.lt.s32.totalorder %s30_s16, %s30_s16 }
   0xa   :  { %p2463_p3 = scmp.ne.s32.totalorder %s30_s16, %s2462_s24  ;;  %p2468_p5 = scmp.lt.s32.totalorder %s2462_s24, %s2462_s24 }
   0xc   :  { %p2469_p6 = por %p2468_p5, %p2467_p4 }
   0xe   :  { %p2470_p7 = pnand %p2469_p6, %p2463_p3 }
  0x10   :  { %2473 = shalt.err (!%p2470_p7)
}
  0x11   :  { %s2547_s25 = smov 128   ;;  %s2548_s26 = smov 8  }
  0x12   :  { %35 = dma.hbm_to_vmem [thread:$0]  %s3305_s2, 640, %s30_s16, [#allocation6], %s2547_s25, %s2547_s25, %s2548_s26  }
  0x13   :  { %s2549_s29 = smov [#allocation2]   ;;  %s2550_s5 = smov [#allocation7]  }
  0x14   :  { %s18_s30 = sshll.u32 %s2549_s29, 4  ;;  %s41_s6 = sshll.u32 %s2550_s5, 4  ;;  %s19_s30 = int_to_ptr.vmem [resolvable:$true] %s18_s30  ;;  %s42_s6 = int_to_ptr.vmem [resolvable:$true] %s41_s6 }
  0x15   :  { %s2474_s9 = scalar_lea.hbm %s3303_s0, 16 }
  0x16   :  { %p2475_p8 = scmp.ne.s32.totalorder %s3303_s0, %s2474_s9  ;;  %p2478_p9 = scmp.lt.u32.totalorder %s2474_s9, %s3303_s0 }
  0x18   :  { %p2480_p10 = pnand %p2478_p9, %p2475_p8 }
  0x1a   :  { %2483 = shalt.err (!%p2480_p10)
}
  0x1b   :  { %s2484_s2 = scalar_lea.vmem %s19_s30, 16  ;;  %s2488_s14 = scalar_lea.vmem %s19_s30, 32 }
  0x1c   :  { %p2485_p11 = scmp.ne.s32.totalorder %s19_s30, %s2484_s2  ;;  %p2489_p12 = scmp.lt.s32.totalorder %s19_s30, %s19_s30 }
  0x1d   :  { %p2490_p13 = scmp.lt.s32.totalorder %s2488_s14, %s2484_s2 }
  0x1f   :  { %p2491_p0 = por %p2490_p13, %p2489_p12 }
  0x21   :  { %p2492_p1 = pnand %p2491_p0, %p2485_p11 }
  0x23   :  { %2495 = shalt.err (!%p2492_p1)
}
  0x24   :  { %21 = dma.hbm_to_vmem [thread:$0]  %s3303_s0, 16, %s19_s30, [#allocation3]  }
  0x25   :  { %s2496_s19 = scalar_lea.hbm %s3306_s3, 640 }
  0x26   :  { %p2497_p2 = scmp.ne.s32.totalorder %s3306_s3, %s2496_s19  ;;  %p2500_p3 = scmp.lt.u32.totalorder %s2496_s19, %s3306_s3 }
  0x28   :  { %p2502_p4 = pnand %p2500_p3, %p2497_p2 }
  0x2a   :  { %2505 = shalt.err (!%p2502_p4)
}
  0x2b   :  { %s2506_s24 = scalar_lea.vmem %s42_s6, 640  ;;  %p2511_p6 = scmp.lt.s32.totalorder %s42_s6, %s42_s6 }
  0x2c   :  { %p2507_p5 = scmp.ne.s32.totalorder %s42_s6, %s2506_s24  ;;  %p2512_p7 = scmp.lt.s32.totalorder %s2506_s24, %s2506_s24 }
  0x2e   :  { %p2513_p8 = por %p2512_p7, %p2511_p6 }
  0x30   :  { %p2514_p9 = pnand %p2513_p8, %p2507_p5 }
  0x32   :  { %2517 = shalt.err (!%p2514_p9)
}
  0x33   :  { %47 = dma.hbm_to_vmem [thread:$0]  %s3306_s3, 640, %s42_s6, [#allocation6], %s2547_s25, %s2547_s25, %s2548_s26  }
  0x34   :  { %2540 = dma.done.wait [#allocation3], 16  }
  0x35   :  { %2541 = vsyncadd [#allocation3], 4294967280 }
  0x36   :  { %2542 = dma.done.wait [#allocation6], 1280  }
  0x37   :  { %2543 = vsyncadd [#allocation6], 4294966016  ;;  %v57_v0 = vlaneseq  ;;  %v3330_v1 = vmov 0.0|0.0   ;;  %vm2552_vm0 = vmmov 0   ;;  %v2553_v3 = vmov 0.0   ;;  %v91_v13 = vld [vmem:[#allocation5] sm:$0xff] }
  0x38   :  { %2212 = vmatprep.subr.bf16.mxu0 %v3330_v1  ;;  %2266 = vmatprep.subr.bf16.mxu1 %v3330_v1  ;;  %vm96_vm1 = vcmask 408576   ;;  %v2634_v9 = vld [vmem:[#allocation2] ss:$0 sm:$0xff]  ;;  %v3309_v19 = vmov 1.0|1.0   ;;  %vm112_vm13 = vcmask 1041408  }
  0x39   :  { %v58_v2 = vshrl.u32 %v57_v0, 7  ;;  %1866 = vmatprep.mubr.msk.f32.mxu0 %vm2552_vm0, %v2553_v3  ;;  %2042 = vmatprep.mubr.msk.f32.mxu1 %vm2552_vm0, %v2553_v3  ;;  %v2639_v10 = vld [vmem:[%s3304_s1] ss:$0 sm:$0xff]  ;;  %v2680_v25 = vsel %vm96_vm1, %v91_v13, 0  ;;  %vm879_vm14 = vcmask 1043456   ;;  %s2556_s1 = smov [#allocation8]  }
  0x3a   :  { %v2788_v62 = vand.u32 4294901760, %v2680_v25  ;;  %s1630_s26 = sshll.u32 %s2556_s1, 4  ;;  %s1631_s26 = int_to_ptr.vmem [resolvable:$true] %s1630_s26 }
  0x3b   :  { %v59_v4 = vadd.s32 8, %v58_v2  ;;  %v60_v5 = vadd.s32 16, %v58_v2  ;;  %v61_v6 = vadd.s32 24, %v58_v2  ;;  %v2630_v7 = vadd.s32 32, %v58_v2  ;;  %s2518_s28 = scalar_lea.vmem %s1631_s26, 64  ;;  %p2523_p11 = scmp.lt.s32.totalorder %s1631_s26, %s1631_s26 }
  0x3c   :  { %v2632_v8 = vadd.s32 40, %v58_v2  ;;  %v2641_v11 = vadd.s32 48, %v58_v2  ;;  %v2643_v12 = vadd.s32 56, %v58_v2  ;;  %vm70_vm2 = vcmp.eq.s32.totalorder %v58_v2, %v2634_v9  ;;  %p2519_p10 = scmp.ne.s32.totalorder %s1631_s26, %s2518_s28  ;;  %p2524_p12 = scmp.lt.s32.totalorder %s2518_s28, %s2518_s28 }
  0x3d   :  { %vm71_vm3 = vcmp.eq.s32.totalorder %v59_v4, %v2634_v9  ;;  %vm834_vm4 = vcmp.eq.s32.totalorder %v58_v2, %v2639_v10  ;;  %vm835_vm5 = vcmp.eq.s32.totalorder %v59_v4, %v2639_v10  ;;  %v1641_v14 = vsel %vm70_vm2, 1.0, %v2553_v3 }
  0x3e   :  { %v1642_v15 = vsel %vm71_vm3, 1.0, %v2553_v3  ;;  %vm2651_vm6 = vmpackc.low %vm71_vm3, %vm70_vm2  ;;  %v1670_v17 = vsel %vm834_vm4, 1.0, %v2553_v3  ;;  %v1671_v18 = vsel %vm835_vm5, 1.0, %v2553_v3  ;;  %v2660_v20 = vsub.f32 %v1641_v14, %v1641_v14  ;;  %p2525_p13 = por %p2524_p12, %p2523_p11 }
  0x3f   :  { %2214 = vmatpush3.bf16.msk.msra.mxu0 %vm2651_vm6, %v3309_v19  ;;  %v2662_v21 = vsub.f32 %v1642_v15, %v1642_v15  ;;  %vm2664_vm7 = vmpackc.low %vm835_vm5, %vm834_vm4  ;;  %v2668_v23 = vsub.f32 %v1670_v17, %v1670_v17  ;;  %v2670_v24 = vsub.f32 %v1671_v18, %v1671_v18  ;;  %vm72_vm8 = vcmp.eq.s32.totalorder %v60_v5, %v2634_v9  ;;  %v859_v18 = vld [vmem:[#allocation7 + $0x8] sm:$0xff] }
  0x40   :  { %2268 = vmatpush3.bf16.msk.msra.mxu1 %vm2664_vm7, %v3309_v19  ;;  %2215 = vmatprep.subr.bf16.mxu0 %v3330_v1  ;;  %vm73_vm9 = vcmp.eq.s32.totalorder %v61_v6, %v2634_v9  ;;  %vm836_vm10 = vcmp.eq.s32.totalorder %v60_v5, %v2639_v10  ;;  %v241_v26 = vand.u32 4294901760, %v2660_v20  ;;  %v1643_v31 = vsel %vm72_vm8, 1.0, %v2553_v3  ;;  %v858_v5 = vld [vmem:[#allocation7] sm:$0xff]  ;;  %p2526_p0 = pnand %p2525_p13, %p2519_p10 }
  0x41   :  { %v3321_v27 = vand.u32 4294901760, %v2662_v21  ;;  %v3318_v28 = vand.u32 4294901760, %v2668_v23  ;;  %v3317_v29 = vand.u32 4294901760, %v2670_v24  ;;  %2269 = vmatprep.subr.bf16.mxu1 %v3330_v1  ;;  %vm2687_vm11 = vmpackc.low %vm73_vm9, %vm72_vm8  ;;  %v1644_v32 = vsel %vm73_vm9, 1.0, %v2553_v3 }
  0x42   :  { %vm837_vm12 = vcmp.eq.s32.totalorder %v61_v6, %v2639_v10  ;;  %v1672_v33 = vsel %vm836_vm10, 1.0, %v2553_v3  ;;  %v2700_v34 = vsub.f32 %v2660_v20, %v241_v26  ;;  %vm863_vm2 = vcmask 490496  }
  0x43   :  { %v2705_v35 = vsub.f32 %v2662_v21, %v3321_v27  ;;  %v2710_v36 = vsub.f32 %v2668_v23, %v3318_v28  ;;  %v2715_v37 = vsub.f32 %v2670_v24, %v3317_v29  ;;  %2217 = vmatpush3.bf16.msk.msra.mxu0 %vm2687_vm11, %v3309_v19  ;;  %vm2722_vm15 = vmpackc.low %vm837_vm12, %vm836_vm10  ;;  %v2726_v39 = vsub.f32 %v1643_v31, %v1643_v31  ;;  %v93_v31 = vld [vmem:[#allocation5 + $0x10] sm:$0xff]  ;;  %v861_v28 = vld [vmem:[#allocation7 + $0x18] sm:$0xff] }
  0x44   :  { %v2728_v40 = vsub.f32 %v1644_v32, %v1644_v32  ;;  %v1673_v41 = vsel %vm837_vm12, 1.0, %v2553_v3  ;;  %2271 = vmatpush3.bf16.msk.msra.mxu1 %vm2722_vm15, %v3309_v19  ;;  %v2734_v42 = vsub.f32 %v1672_v33, %v1672_v33  ;;  %2218 = vmatprep.subr.bf16.mxu0 %v3330_v1  ;;  %v243_v43 = vand.u32 4294901760, %v2700_v34 }
  0x45   :  { %v250_v44 = vand.u32 4294901760, %v2705_v35  ;;  %v1011_v45 = vand.u32 4294901760, %v2710_v36  ;;  %v1018_v46 = vand.u32 4294901760, %v2715_v37  ;;  %2272 = vmatprep.subr.bf16.mxu1 %v3330_v1  ;;  %v3313_v47 = vand.u32 4294901760, %v2726_v39 }
  0x46   :  { %v3311_v48 = vand.u32 4294901760, %v2728_v40  ;;  %v3312_v49 = vand.u32 4294901760, %v2734_v42  ;;  %v2745_v50 = vsub.f32 %v1673_v41, %v1673_v41  ;;  %vm74_vm3 = vcmp.eq.s32.totalorder %v2630_v7, %v2634_v9 }
  0x47   :  { %vm75_vm4 = vcmp.eq.s32.totalorder %v2632_v8, %v2634_v9  ;;  %vm838_vm5 = vcmp.eq.s32.totalorder %v2630_v7, %v2639_v10  ;;  %vm839_vm8 = vcmp.eq.s32.totalorder %v2632_v8, %v2639_v10  ;;  %v1645_v52 = vsel %vm74_vm3, 1.0, %v2553_v3 }
  0x48   :  { %v3315_v51 = vand.u32 4294901760, %v2745_v50  ;;  %v1646_v53 = vsel %vm75_vm4, 1.0, %v2553_v3  ;;  %vm2758_vm9 = vmpackc.low %vm75_vm4, %vm74_vm3  ;;  %v1674_v55 = vsel %vm838_vm5, 1.0, %v2553_v3  ;;  %v2766_v56 = vsub.f32 %v1645_v52, %v1645_v52 }
  0x49   :  { %2220 = vmatpush3.bf16.msk.msra.mxu0 %vm2758_vm9, %v3309_v19  ;;  %v2768_v57 = vsub.f32 %v1646_v53, %v1646_v53  ;;  %v1675_v58 = vsel %vm839_vm8, 1.0, %v2553_v3  ;;  %vm2771_vm10 = vmpackc.low %vm839_vm8, %vm838_vm5  ;;  %v2775_v60 = vsub.f32 %v1674_v55, %v1674_v55  ;;  %vm76_vm12 = vcmp.eq.s32.totalorder %v2641_v11, %v2634_v9  ;;  %v92_v9 = vld [vmem:[#allocation5 + $0x8] sm:$0xff] }
  0x4a   :  { %2274 = vmatpush3.bf16.msk.msra.mxu1 %vm2771_vm10, %v3309_v19  ;;  %v2780_v61 = vsub.f32 %v1675_v58, %v1675_v58  ;;  %1864 = vmatprep.subr.mxu0 %v2553_v3  ;;  %vm840_vm3 = vcmp.eq.s32.totalorder %v2641_v11, %v2639_v10  ;;  %v269_v63 = vand.u32 4294901760, %v2766_v56  ;;  %v2795_v4 = vsel %vm76_vm12, 1.0, %v2553_v3 }
  0x4b   :  { %v3324_v0 = vand.u32 4294901760, %v2768_v57  ;;  %v3322_v2 = vand.u32 4294901760, %v2775_v60  ;;  %2275 = vmatprep.subr.bf16.mxu1 %v3330_v1  ;;  %v114_v7 = vsel %vm112_vm13, %v2795_v4, 0  ;;  %vm841_vm4 = vcmp.eq.s32.totalorder %v2643_v12, %v2639_v10  ;;  %vm2815_vm5 = vmpackc.low %vm879_vm14, %vm840_vm3 }
  0x4c   :  { %v3323_v6 = vand.u32 4294901760, %v2780_v61  ;;  %v1676_v8 = vsel %vm840_vm3, 1.0, %v2553_v3  ;;  %v2808_v13 = vsub.f32 %v114_v7, %v114_v7  ;;  %v1677_v14 = vsel %vm841_vm4, 1.0, %v2553_v3 }
  0x4d   :  { %1865 = vmatpush3.msk.msra.mxu0 %vm112_vm13, %v2795_v4  ;;  %v2819_v12 = vsub.f32 %v1676_v8, %v1676_v8  ;;  %v2823_v17 = vsub.f32 %v2680_v25, %v2788_v62  ;;  %v881_v32 = vsel %vm879_vm14, %v1677_v14, 0  ;;  %v2555_v33 = vmov 1.0  }
  0x4e   :  { %v2826_v34 = vpack.c.bf16 %v1677_v14, %v2555_v33  ;;  %2221 = vmatprep.subr.bf16.mxu0 %v3330_v1  ;;  %v865_v10 = vsel %vm863_vm2, %v858_v5, 0  ;;  %v2222_v11 = vpack.c.bf16 %v250_v44, %v243_v43  ;;  %v2831_v36 = vsub.f32 %v881_v32, %v881_v32  ;;  %v860_v32 = vld [vmem:[#allocation7 + $0x10] sm:$0xff] }
  0x4f   :  { %v1051_v35 = vand.u32 4294901760, %v2819_v12  ;;  %v3308_v37 = vand.u32 4294901760, %v2823_v17  ;;  %v2834_v25 = vand.u32 4294901760, %v865_v10  ;;  %v2280_v41 = vpack.c.bf16 %v1018_v46, %v1011_v45 }
  0x50   :  { %2278 = vmatpush3.bf16.msk.msra.mxu1 %vm2815_vm5, %v2826_v34  ;;  %v101_v52 = vsel %vm96_vm1, %v92_v9, 0  ;;  %v868_v53 = vsel %vm863_vm2, %v859_v18, 0  ;;  %v104_v55 = vsel %vm96_vm1, %v93_v31, 0  ;;  %v1058_v43 = vand.u32 4294901760, %v2831_v36 }
  0x51   :  { %v191_v44 = vsub.f32 %v2823_v17, %v3308_v37  ;;  %v2847_v58 = vsub.f32 %v865_v10, %v2834_v25  ;;  %2279 = vmatprep.subr.bf16.mxu1 %v3330_v1  ;;  %v2850_v5 = vand.u32 4294901760, %v101_v52  ;;  %v2852_v45 = vand.u32 4294901760, %v868_v53 }
  0x52   :  { %v2854_v46 = vand.u32 4294901760, %v104_v55  ;;  %v256_v7 = vsub.f32 %v2726_v39, %v3313_v47  ;;  %v263_v8 = vsub.f32 %v2728_v40, %v3311_v48  ;;  %v1024_v31 = vsub.f32 %v2734_v42, %v3312_v49  ;;  %v94_v47 = vld [vmem:[#allocation5 + $0x18] sm:$0xff] }
  0x53   :  { %v192_v9 = vand.u32 4294901760, %v191_v44  ;;  %v3314_v14 = vand.u32 4294901760, %v2847_v58  ;;  %v2864_v18 = vsub.f32 %v101_v52, %v2850_v5  ;;  %v2870_v33 = vsub.f32 %v868_v53, %v2852_v45 }
  0x54   :  { %v2873_v10 = vsub.f32 %v104_v55, %v2854_v46  ;;  %v257_v37 = vand.u32 4294901760, %v256_v7  ;;  %v264_v19 = vand.u32 4294901760, %v263_v8  ;;  %v1025_v48 = vand.u32 4294901760, %v1024_v31 }
  0x55   :  { %1867 = vmatmul.mubr.f32.vlgmr.msra.gmra.mrb[0].mxu0 %v192_v9  ;;  %v959_v44 = vsub.f32 %v2847_v58, %v3314_v14  ;;  %v3316_v52 = vand.u32 4294901760, %v2864_v18  ;;  %v1031_v49 = vsub.f32 %v2745_v50, %v3315_v51  ;;  %v3319_v53 = vand.u32 4294901760, %v2870_v33 }
  0x56   :  { %1869 = vmatprep.mubr.msk.f32.mxu0 %vm2552_vm0, %v2553_v3  ;;  %2223 = vmatpush3.bf16.msra.mxu0 %v2222_v11  ;;  %v3320_v55 = vand.u32 4294901760, %v2873_v10  ;;  %v2225_v7 = vpack.c.bf16 %v264_v19, %v257_v37  ;;  %v871_v8 = vsel %vm863_vm2, %v860_v32, 0  ;;  %v107_v37 = vsel %vm96_vm1, %v94_v47, 0 }
  0x57   :  { %v960_v9 = vand.u32 4294901760, %v959_v44  ;;  %v201_v31 = vsub.f32 %v2864_v18, %v3316_v52  ;;  %2224 = vmatprep.subr.bf16.mxu0 %v3330_v1  ;;  %v1032_v14 = vand.u32 4294901760, %v1031_v49  ;;  %v2891_v51 = vand.u32 4294901760, %v871_v8 }
  0x58   :  { %v969_v11 = vsub.f32 %v2870_v33, %v3319_v53  ;;  %v211_v19 = vsub.f32 %v2873_v10, %v3320_v55  ;;  %v270_v32 = vsub.f32 %v2766_v56, %v269_v63  ;;  %v2906_v29 = vand.u32 4294901760, %v107_v37  ;;  %v95_v53 = vld [vmem:[#allocation5 + $0x20] sm:$0xff] }
  0x59   :  { %2043 = vmatmul.mubr.f32.vlgmr.msra.gmra.mrb[0].mxu1 %v960_v9  ;;  %v202_v44 = vand.u32 4294901760, %v201_v31  ;;  %v2283_v52 = vpack.c.bf16 %v1032_v14, %v1025_v48  ;;  %v2904_v49 = vsub.f32 %v871_v8, %v2891_v51  ;;  %v277_v9 = vsub.f32 %v2768_v57, %v3324_v0 }
  0x5a   :  { %2281 = vmatpush3.bf16.msra.mxu1 %v2280_v41  ;;  %2045 = vmatprep.mubr.msk.f32.mxu1 %vm2552_vm0, %v2553_v3  ;;  %v970_v55 = vand.u32 4294901760, %v969_v11  ;;  %v212_v47 = vand.u32 4294901760, %v211_v19  ;;  %v271_v27 = vand.u32 4294901760, %v270_v32  ;;  %v2916_v14 = vsub.f32 %v107_v37, %v2906_v29  ;;  %v862_v32 = vld [vmem:[#allocation7 + $0x20] sm:$0xff] }
  0x5b   :  { %1870 = vmatmul.mubr.f32.gmra.mrb[2].mxu0 %v202_v44  ;;  %2282 = vmatprep.subr.bf16.mxu1 %v3330_v1  ;;  %v3329_v48 = vand.u32 4294901760, %v2904_v49  ;;  %v1038_v41 = vsub.f32 %v2775_v60, %v3322_v2  ;;  %v1045_v8 = vsub.f32 %v2780_v61, %v3323_v6  ;;  %v278_v31 = vand.u32 4294901760, %v277_v9 }
  0x5c   :  { %1872 = vmatprep.mubr.msk.f32.mxu0 %vm2552_vm0, %v2553_v3  ;;  %2226 = vmatpush3.bf16.msra.mxu0 %v2225_v7  ;;  %v874_v11 = vsel %vm863_vm2, %v861_v28, 0  ;;  %v110_v19 = vsel %vm96_vm1, %v95_v53, 0  ;;  %v3325_v37 = vand.u32 4294901760, %v2808_v13  ;;  %v3327_v2 = vand.u32 4294901760, %v2916_v14 }
  0x5d   :  { %2046 = vmatmul.mubr.f32.gmra.mrb[2].mxu1 %v970_v55  ;;  %v979_v44 = vsub.f32 %v2904_v49, %v3329_v48  ;;  %2227 = vmatprep.subr.bf16.mxu0 %v3330_v1  ;;  %v1039_v6 = vand.u32 4294901760, %v1038_v41  ;;  %v1046_v0 = vand.u32 4294901760, %v1045_v8  ;;  %v2228_v28 = vpack.c.bf16 %v278_v31, %v271_v27 }
  0x5e   :  { %2284 = vmatpush3.bf16.msra.mxu1 %v2283_v52  ;;  %2048 = vmatprep.mubr.msk.f32.mxu1 %vm2552_vm0, %v2553_v3  ;;  %v2936_v53 = vand.u32 4294901760, %v874_v11  ;;  %v2938_v7 = vand.u32 4294901760, %v110_v19  ;;  %v284_v55 = vsub.f32 %v2808_v13, %v3325_v37  ;;  %v221_v41 = vsub.f32 %v2916_v14, %v3327_v2 }
  0x5f   :  { %1873 = vmatmul.mubr.f32.gmra.mrb[4].mxu0 %v212_v47  ;;  %v980_v9 = vand.u32 4294901760, %v979_v44  ;;  %2285 = vmatprep.subr.bf16.mxu1 %v3330_v1  ;;  %v2286_v52 = vpack.c.bf16 %v1046_v0, %v1039_v6  ;;  %v877_v8 = vsel %vm863_vm2, %v862_v32, 0  ;;  %v1052_v0 = vsub.f32 %v2819_v12, %v1051_v35 }
  0x60   :  { %1875 = vmatprep.mubr.msk.f32.mxu0 %vm2552_vm0, %v2553_v3  ;;  %2229 = vmatpush3.bf16.msra.mxu0 %v2228_v28  ;;  %v2951_v27 = vsub.f32 %v874_v11, %v2936_v53  ;;  %v2954_v31 = vsub.f32 %v110_v19, %v2938_v7  ;;  %v285_v47 = vand.u32 4294901760, %v284_v55  ;;  %v2956_v44 = vand.u32 4294901760, %v877_v8 }
  0x61   :  { %2049 = vmatmul.mubr.f32.gmra.mrb[4].mxu1 %v980_v9  ;;  %v222_v37 = vand.u32 4294901760, %v221_v41  ;;  %1893 = vmatprep.subr.mxu0 %v2553_v3  ;;  %v1059_v6 = vsub.f32 %v2831_v36, %v1058_v43  ;;  %v1053_v28 = vand.u32 4294901760, %v1052_v0 }
  0x62   :  { %2051 = vmatprep.mubr.msk.f32.mxu1 %vm2552_vm0, %v2553_v3  ;;  %2287 = vmatpush3.bf16.msra.mxu1 %v2286_v52  ;;  %v3326_v11 = vand.u32 4294901760, %v2951_v27  ;;  %v3328_v19 = vand.u32 4294901760, %v2954_v31  ;;  %v2970_v32 = vsub.f32 %v877_v8, %v2956_v44 }
  0x63   :  { %1876 = vmatmul.mubr.f32.gmra.mrb[6].mxu0 %v222_v37  ;;  %2288 = vmatprep.subr.bf16.mxu1 %v3330_v1  ;;  %v1060_v55 = vand.u32 4294901760, %v1059_v6  ;;  %v3347_v37 = vand.u32 4294901760, %v2662_v21 }
  0x64   :  { %v989_v9 = vsub.f32 %v2951_v27, %v3326_v11  ;;  %1878 = vmatprep.mubr.msk.f32.mxu0 %vm2552_vm0, %v2553_v3  ;;  %v231_v41 = vsub.f32 %v2954_v31, %v3328_v19  ;;  %1894 = vmatpush3.msra.mxu0 %v285_v47  ;;  %v3332_v52 = vand.u32 4294901760, %v2970_v32  ;;  %v3348_v19 = vand.u32 4294901760, %v2668_v23 }
  0x65   :  { %v2289_v8 = vpack.c.bf16 %v1060_v55, %v1053_v28  ;;  %2230 = vmatprep.subr.bf16.mxu0 %v3330_v1  ;;  %v2987_v0 = vpack.c.bf16 %v3347_v37, %v241_v26  ;;  %v3349_v47 = vand.u32 4294901760, %v2670_v24  ;;  %v3350_v28 = vand.u32 4294901760, %v2726_v39 }
  0x66   :  { %v990_v6 = vand.u32 4294901760, %v989_v9  ;;  %v232_v11 = vand.u32 4294901760, %v231_v41  ;;  %v999_v2 = vsub.f32 %v2970_v32, %v3332_v52  ;;  %v3351_v55 = vand.u32 4294901760, %v2728_v40 }
  0x67   :  { %v2996_v48 = vpack.c.bf16 %v3349_v47, %v3348_v19  ;;  %2290 = vmatpush3.bf16.msra.mxu1 %v2289_v8  ;;  %v3352_v26 = vand.u32 4294901760, %v2734_v42  ;;  %v3353_v9 = vand.u32 4294901760, %v2745_v50  ;;  %v3354_v37 = vand.u32 4294901760, %v2768_v57 }
  0x68   :  { %v3002_v1 = vpack.c.bf16 %v3351_v55, %v3350_v28  ;;  %v3355_v19 = vand.u32 4294901760, %v2775_v60  ;;  %v3356_v8 = vand.u32 4294901760, %v2780_v61  ;;  %2052 = vmatmul.mubr.f32.gmra.mrb[6].mxu1 %v990_v6  ;;  %1879 = vmatmul.mubr.f32.gmra.mrb[8].mxu0 %v232_v11  ;;  %v1000_v28 = vand.u32 4294901760, %v999_v2 }
  0x69   :  { %v3008_v41 = vpack.c.bf16 %v3353_v9, %v3352_v26  ;;  %v3014_v52 = vpack.c.bf16 %v3354_v37, %v269_v63  ;;  %v3026_v55 = vpack.c.bf16 %v1058_v43, %v1051_v35  ;;  %2054 = vmatprep.mubr.msk.f32.mxu1 %vm2552_vm0, %v2553_v3  ;;  %1895 = vmatprep.mubr.msk.f32.mxu0 %vm2552_vm0, %v2553_v3  ;;  %v3357_v63 = vmov 0.0|0.0  }
  0x6a   :  { %v3020_v47 = vpack.c.bf16 %v3356_v8, %v3355_v19  ;;  %2291 = vmatprep.subr.bf16.mxu1 %v3357_v63  ;;  %v2231_v26 = vpack.c.bf16 %v2662_v21, %v2660_v20  ;;  %v2292_v2 = vpack.c.bf16 %v2670_v24, %v2668_v23  ;;  %v2234_v35 = vpack.c.bf16 %v2728_v40, %v2726_v39 }
  0x6b   :  { %v2295_v20 = vpack.c.bf16 %v2745_v50, %v2734_v42  ;;  %v2237_v21 = vpack.c.bf16 %v2768_v57, %v2766_v56  ;;  %v2298_v23 = vpack.c.bf16 %v2780_v61, %v2775_v60  ;;  %v2301_v24 = vpack.c.bf16 %v2831_v36, %v2819_v12 }
  0x6c   :  { %2055 = vmatmul.mubr.f32.gmra.mrb[8].mxu1 %v1000_v28  ;;  %1896 = vmatmul.mubr.f32.vlgmr.msra.gmra.mrb[0].mxu0 %v2788_v62  ;;  %v3358_v39 = vmov 1.0|1.0   ;;  %v3359_v40 = vand.u32 4294901760, %v2823_v17  ;;  %v3360_v42 = vand.u32 4294901760, %v2847_v58  ;;  %v3361_v50 = vand.u32 4294901760, %v2864_v18 }
  0x6d   :  { %2073 = vmatprep.mubr.msk.f32.mxu1 %vm2552_vm0, %v2553_v3  ;;  %1898 = vmatprep.mubr.msk.f32.mxu0 %vm2552_vm0, %v2553_v3  ;;  %v3362_v56 = vand.u32 4294901760, %v2870_v33  ;;  %v3363_v57 = vand.u32 4294901760, %v2873_v10  ;;  %v3365_v60 = vand.u32 4294901760, %v2916_v14  ;;  %v3366_v61 = vand.u32 4294901760, %v2808_v13 }
  0x6e   :  { %2232 = vmatpush3.bf16.msra.mxu0 %v2231_v26  ;;  %v3367_v12 = vand.u32 4294901760, %v2951_v27 }
  0x6f   :  { %2233 = vmatprep.subr.bf16.mxu0 %v3357_v63 }
  0x70   :  { %2074 = vmatmul.mubr.f32.vlgmr.msra.gmra.mrb[0].mxu1 %v2834_v25  ;;  %1899 = vmatmul.mubr.f32.gmra.mrb[2].mxu0 %v2850_v5 }
  0x71   :  { %2293 = vmatpush3.bf16.msra.mxu1 %v2292_v2  ;;  %2076 = vmatprep.mubr.msk.f32.mxu1 %vm2552_vm0, %v2553_v3 }
  0x72   :  { %1901 = vmatprep.mubr.msk.f32.mxu0 %vm2552_vm0, %v2553_v3  ;;  %2294 = vmatprep.subr.bf16.mxu1 %v3357_v63 }
  0x73   :  { %2235 = vmatpush3.bf16.msra.mxu0 %v2234_v35 }
  0x74   :  { %2077 = vmatmul.mubr.f32.gmra.mrb[2].mxu1 %v2852_v45  ;;  %1902 = vmatmul.mubr.f32.gmra.mrb[4].mxu0 %v2854_v46 }
  0x75   :  { %2296 = vmatpush3.bf16.msra.mxu1 %v2295_v20  ;;  %2079 = vmatprep.mubr.msk.f32.mxu1 %vm2552_vm0, %v2553_v3 }
  0x76   :  { %1904 = vmatprep.mubr.msk.f32.mxu0 %vm2552_vm0, %v2553_v3  ;;  %2236 = vmatprep.subr.bf16.mxu0 %v3357_v63 }
  0x77   :  { %2297 = vmatprep.subr.bf16.mxu1 %v3357_v63  ;;  %2238 = vmatpush3.bf16.msra.mxu0 %v2237_v21 }
  0x78   :  { %2080 = vmatmul.mubr.f32.gmra.mrb[4].mxu1 %v2891_v51  ;;  %1905 = vmatmul.mubr.f32.gmra.mrb[6].mxu0 %v2906_v29 }
  0x79   :  { %2082 = vmatprep.mubr.msk.f32.mxu1 %vm2552_vm0, %v2553_v3  ;;  %2299 = vmatpush3.bf16.msra.mxu1 %v2298_v23 }
  0x7a   :  { %1907 = vmatprep.mubr.msk.f32.mxu0 %vm2552_vm0, %v2553_v3  ;;  %1922 = vmatprep.subr.mxu0 %v2553_v3 }
  0x7b   :  { %2300 = vmatprep.subr.bf16.mxu1 %v3357_v63  ;;  %1923 = vmatpush3.msra.mxu0 %v2808_v13  ;;  %v3369_v13 = vand.u32 4294901760, %v2970_v32 }
  0x7c   :  { %2083 = vmatmul.mubr.f32.gmra.mrb[6].mxu1 %v2936_v53  ;;  %1908 = vmatmul.mubr.f32.gmra.mrb[8].mxu0 %v2938_v7 }
  0x7d   :  { %2085 = vmatprep.mubr.msk.f32.mxu1 %vm2552_vm0, %v2553_v3  ;;  %2302 = vmatpush3.bf16.msra.mxu1 %v2301_v24 }
  0x7e   :  { %1924 = vmatprep.mubr.msk.f32.mxu0 %vm2552_vm0, %v2553_v3  ;;  %2239 = vmatprep.subr.bf16.mxu0 %v3357_v63 }
  0x7f   :  { %2303 = vmatprep.subr.bf16.mxu1 %v3357_v63 }
  0x80   :  { %2086 = vmatmul.mubr.f32.gmra.mrb[8].mxu1 %v2956_v44  ;;  %1925 = vmatmul.mubr.f32.vlgmr.msra.gmra.mrb[0].mxu0 %v2823_v17  ;;  %v3368_v17 = vand.u32 4294901760, %v2954_v31 }
  0x81   :  { %2104 = vmatprep.mubr.msk.f32.mxu1 %vm2552_vm0, %v2553_v3  ;;  %1927 = vmatprep.mubr.msk.f32.mxu0 %vm2552_vm0, %v2553_v3 }
  0x82   :  { %2241 = vmatpush3.bf16.msk.msra.mxu0 %vm2651_vm6, %v3358_v39 }
  0x83   :  { %2242 = vmatprep.subr.bf16.mxu0 %v3357_v63 }
  0x84   :  { %2105 = vmatmul.mubr.f32.vlgmr.msra.gmra.mrb[0].mxu1 %v2847_v58  ;;  %1928 = vmatmul.mubr.f32.gmra.mrb[2].mxu0 %v2864_v18 }
  0x85   :  { %2305 = vmatpush3.bf16.msk.msra.mxu1 %vm2664_vm7, %v3358_v39  ;;  %2107 = vmatprep.mubr.msk.f32.mxu1 %vm2552_vm0, %v2553_v3 }
  0x86   :  { %1930 = vmatprep.mubr.msk.f32.mxu0 %vm2552_vm0, %v2553_v3  ;;  %2306 = vmatprep.subr.bf16.mxu1 %v3357_v63 }
  0x87   :  { %2244 = vmatpush3.bf16.msk.msra.mxu0 %vm2687_vm11, %v3358_v39 }
  0x88   :  { %2108 = vmatmul.mubr.f32.gmra.mrb[2].mxu1 %v2870_v33  ;;  %1931 = vmatmul.mubr.f32.gmra.mrb[4].mxu0 %v2873_v10 }
  0x89   :  { %2308 = vmatpush3.bf16.msk.msra.mxu1 %vm2722_vm15, %v3358_v39  ;;  %2110 = vmatprep.mubr.msk.f32.mxu1 %vm2552_vm0, %v2553_v3 }
  0x8a   :  { %1933 = vmatprep.mubr.msk.f32.mxu0 %vm2552_vm0, %v2553_v3  ;;  %2245 = vmatprep.subr.bf16.mxu0 %v3357_v63 }
  0x8b   :  { %2309 = vmatprep.subr.bf16.mxu1 %v3357_v63  ;;  %2247 = vmatpush3.bf16.msk.msra.mxu0 %vm2758_vm9, %v3358_v39 }
  0x8c   :  { %2111 = vmatmul.mubr.f32.gmra.mrb[4].mxu1 %v2904_v49  ;;  %1934 = vmatmul.mubr.f32.gmra.mrb[6].mxu0 %v2916_v14 }
  0x8d   :  { %2113 = vmatprep.mubr.msk.f32.mxu1 %vm2552_vm0, %v2553_v3  ;;  %2311 = vmatpush3.bf16.msk.msra.mxu1 %vm2771_vm10, %v3358_v39 }
  0x8e   :  { %1936 = vmatprep.mubr.msk.f32.mxu0 %vm2552_vm0, %v2553_v3  ;;  %1951 = vmatprep.subr.mxu0 %v2553_v3 }
  0x8f   :  { %2312 = vmatprep.subr.bf16.mxu1 %v3357_v63  ;;  %1952 = vmatpush3.msk.msra.mxu0 %vm112_vm13, %v2795_v4 }
  0x90   :  { %2114 = vmatmul.mubr.f32.gmra.mrb[6].mxu1 %v2951_v27  ;;  %1937 = vmatmul.mubr.f32.gmra.mrb[8].mxu0 %v2954_v31 }
  0x91   :  { %2116 = vmatprep.mubr.msk.f32.mxu1 %vm2552_vm0, %v2553_v3  ;;  %2315 = vmatpush3.bf16.msk.msra.mxu1 %vm2815_vm5, %v2826_v34 }
  0x92   :  { %1953 = vmatprep.mubr.msk.f32.mxu0 %vm2552_vm0, %v2553_v3  ;;  %2248 = vmatprep.subr.bf16.mxu0 %v3357_v63 }
  0x93   :  { %2316 = vmatprep.subr.bf16.mxu1 %v3357_v63 }
  0x94   :  { %2117 = vmatmul.mubr.f32.gmra.mrb[8].mxu1 %v2970_v32  ;;  %1954 = vmatmul.mubr.f32.vlgmr.msra.gmra.mrb[0].mxu0 %v3359_v40 }
  0x95   :  { %2135 = vmatprep.mubr.msk.f32.mxu1 %vm2552_vm0, %v2553_v3  ;;  %1956 = vmatprep.mubr.msk.f32.mxu0 %vm2552_vm0, %v2553_v3 }
  0x96   :  { %2250 = vmatpush3.bf16.msra.mxu0 %v2987_v0 }
  0x97   :  { %2251 = vmatprep.subr.bf16.mxu0 %v3357_v63 }
  0x98   :  { %2136 = vmatmul.mubr.f32.vlgmr.msra.gmra.mrb[0].mxu1 %v3360_v42  ;;  %1957 = vmatmul.mubr.f32.gmra.mrb[2].mxu0 %v3361_v50 }
  0x99   :  { %2318 = vmatpush3.bf16.msra.mxu1 %v2996_v48  ;;  %2138 = vmatprep.mubr.msk.f32.mxu1 %vm2552_vm0, %v2553_v3 }
  0x9a   :  { %1959 = vmatprep.mubr.msk.f32.mxu0 %vm2552_vm0, %v2553_v3  ;;  %2319 = vmatprep.subr.bf16.mxu1 %v3357_v63 }
  0x9b   :  { %2253 = vmatpush3.bf16.msra.mxu0 %v3002_v1  ;;  %v3364_v1 = vand.u32 4294901760, %v2904_v49 }
  0x9c   :  { %2139 = vmatmul.mubr.f32.gmra.mrb[2].mxu1 %v3362_v56  ;;  %1960 = vmatmul.mubr.f32.gmra.mrb[4].mxu0 %v3363_v57 }
  0x9d   :  { %2321 = vmatpush3.bf16.msra.mxu1 %v3008_v41  ;;  %2141 = vmatprep.mubr.msk.f32.mxu1 %vm2552_vm0, %v2553_v3 }
  0x9e   :  { %1962 = vmatprep.mubr.msk.f32.mxu0 %vm2552_vm0, %v2553_v3  ;;  %2254 = vmatprep.subr.bf16.mxu0 %v3357_v63 }
  0x9f   :  { %2322 = vmatprep.subr.bf16.mxu1 %v3357_v63  ;;  %2256 = vmatpush3.bf16.msra.mxu0 %v3014_v52 }
  0xa0   :  { %2142 = vmatmul.mubr.f32.gmra.mrb[4].mxu1 %v3364_v1  ;;  %1963 = vmatmul.mubr.f32.gmra.mrb[6].mxu0 %v3365_v60 }
  0xa1   :  { %2144 = vmatprep.mubr.msk.f32.mxu1 %vm2552_vm0, %v2553_v3  ;;  %2324 = vmatpush3.bf16.msra.mxu1 %v3020_v47 }
  0xa2   :  { %1965 = vmatprep.mubr.msk.f32.mxu0 %vm2552_vm0, %v2553_v3  ;;  %1980 = vmatprep.subr.mxu0 %v2553_v3 }
  0xa3   :  { %2325 = vmatprep.subr.bf16.mxu1 %v3357_v63  ;;  %1981 = vmatpush3.msra.mxu0 %v3366_v61 }
  0xa4   :  { %2145 = vmatmul.mubr.f32.gmra.mrb[6].mxu1 %v3367_v12  ;;  %1966 = vmatmul.mubr.f32.gmra.mrb[8].mxu0 %v3368_v17 }
  0xa5   :  { %2147 = vmatprep.mubr.msk.f32.mxu1 %vm2552_vm0, %v2553_v3  ;;  %2327 = vmatpush3.bf16.msra.mxu1 %v3026_v55 }
  0xa6   :  { %1982 = vmatprep.mubr.msk.f32.mxu0 %vm2552_vm0, %v2553_v3  ;;  %2257 = vmatprep.subr.bf16.mxu0 %v3357_v63 }
  0xa7   :  { %2328 = vmatprep.subr.bf16.mxu1 %v3357_v63 }
  0xa8   :  { %2148 = vmatmul.mubr.f32.gmra.mrb[8].mxu1 %v3369_v13  ;;  %1983 = vmatmul.mubr.f32.vlgmr.msra.gmra.mrb[0].mxu0 %v2788_v62 }
  0xa9   :  { %2166 = vmatprep.mubr.msk.f32.mxu1 %vm2552_vm0, %v2553_v3  ;;  %1985 = vmatprep.mubr.msk.f32.mxu0 %vm2552_vm0, %v2553_v3 }
  0xaa   :  { %2259 = vmatpush3.bf16.msk.msra.mxu0 %vm2651_vm6, %v3358_v39 }
  0xab   :  { %2260 = vmatprep.subr.bf16.mxu0 %v3357_v63 }
  0xac   :  { %2167 = vmatmul.mubr.f32.vlgmr.msra.gmra.mrb[0].mxu1 %v2834_v25  ;;  %1986 = vmatmul.mubr.f32.gmra.mrb[2].mxu0 %v2850_v5 }
  0xad   :  { %2330 = vmatpush3.bf16.msk.msra.mxu1 %vm2664_vm7, %v3358_v39  ;;  %2169 = vmatprep.mubr.msk.f32.mxu1 %vm2552_vm0, %v2553_v3 }
  0xae   :  { %1988 = vmatprep.mubr.msk.f32.mxu0 %vm2552_vm0, %v2553_v3  ;;  %2331 = vmatprep.subr.bf16.mxu1 %v3357_v63 }
  0xaf   :  { %2262 = vmatpush3.bf16.msk.msra.mxu0 %vm2687_vm11, %v3358_v39 }
  0xb0   :  { %2170 = vmatmul.mubr.f32.gmra.mrb[2].mxu1 %v2852_v45  ;;  %1989 = vmatmul.mubr.f32.gmra.mrb[4].mxu0 %v2854_v46 }
  0xb1   :  { %2333 = vmatpush3.bf16.msk.msra.mxu1 %vm2722_vm15, %v3358_v39  ;;  %2172 = vmatprep.mubr.msk.f32.mxu1 %vm2552_vm0, %v2553_v3 }
  0xb2   :  { %1991 = vmatprep.mubr.msk.f32.mxu0 %vm2552_vm0, %v2553_v3  ;;  %2263 = vmatprep.subr.bf16.mxu0 %v3357_v63 }
  0xb3   :  { %2334 = vmatprep.subr.bf16.mxu1 %v3357_v63  ;;  %2265 = vmatpush3.bf16.msk.msra.mxu0 %vm2758_vm9, %v3358_v39 }
  0xb4   :  { %2173 = vmatmul.mubr.f32.gmra.mrb[4].mxu1 %v2891_v51  ;;  %1992 = vmatmul.mubr.f32.gmra.mrb[6].mxu0 %v2906_v29 }
  0xb5   :  { %2175 = vmatprep.mubr.msk.f32.mxu1 %vm2552_vm0, %v2553_v3  ;;  %2336 = vmatpush3.bf16.msk.msra.mxu1 %vm2771_vm10, %v3358_v39 }
  0xb6   :  { %1994 = vmatprep.mubr.msk.f32.mxu0 %vm2552_vm0, %v2553_v3  ;;  %2009 = vmatprep.subr.mxu0 %v2553_v3 }
  0xb7   :  { %2337 = vmatprep.subr.bf16.mxu1 %v3357_v63  ;;  %2010 = vmatpush3.msk.msra.mxu0 %vm112_vm13, %v2795_v4 }
  0xb8   :  { %2176 = vmatmul.mubr.f32.gmra.mrb[6].mxu1 %v2936_v53  ;;  %1995 = vmatmul.mubr.f32.gmra.mrb[8].mxu0 %v2938_v7 }
  0xb9   :  { %2178 = vmatprep.mubr.msk.f32.mxu1 %vm2552_vm0, %v2553_v3  ;;  %2340 = vmatpush3.bf16.msk.msra.mxu1 %vm2815_vm5, %v2826_v34 }
  0xba   :  { %2011 = vmatprep.mubr.msk.f32.mxu0 %vm2552_vm0, %v2553_v3 }
  0xbc   :  { %2179 = vmatmul.mubr.f32.gmra.mrb[8].mxu1 %v2956_v44  ;;  %2012 = vmatmul.mubr.f32.vlgmr.msra.gmra.mrb[0].mxu0 %v2788_v62 }
  0xbd   :  { %2197 = vmatprep.mubr.msk.f32.mxu1 %vm2552_vm0, %v2553_v3  ;;  %2014 = vmatprep.mubr.msk.f32.mxu0 %vm2552_vm0, %v2553_v3 }
  0xc0   :  { %2198 = vmatmul.mubr.f32.vlgmr.msra.gmra.mrb[0].mxu1 %v2834_v25  ;;  %2015 = vmatmul.mubr.f32.gmra.mrb[2].mxu0 %v2850_v5 }
  0xc1   :  { %2200 = vmatprep.mubr.msk.f32.mxu1 %vm2552_vm0, %v2553_v3  ;;  %2017 = vmatprep.mubr.msk.f32.mxu0 %vm2552_vm0, %v2553_v3 }
  0xc4   :  { %2201 = vmatmul.mubr.f32.gmra.mrb[2].mxu1 %v2852_v45  ;;  %2018 = vmatmul.mubr.f32.gmra.mrb[4].mxu0 %v2854_v46 }
  0xc5   :  { %2203 = vmatprep.mubr.msk.f32.mxu1 %vm2552_vm0, %v2553_v3  ;;  %2020 = vmatprep.mubr.msk.f32.mxu0 %vm2552_vm0, %v2553_v3 }
  0xc8   :  { %2204 = vmatmul.mubr.f32.gmra.mrb[4].mxu1 %v2891_v51  ;;  %2021 = vmatmul.mubr.f32.gmra.mrb[6].mxu0 %v2906_v29 }
  0xc9   :  { %2206 = vmatprep.mubr.msk.f32.mxu1 %vm2552_vm0, %v2553_v3  ;;  %2023 = vmatprep.mubr.msk.f32.mxu0 %vm2552_vm0, %v2553_v3 }
  0xcc   :  { %2207 = vmatmul.mubr.f32.gmra.mrb[6].mxu1 %v2936_v53  ;;  %2024 = vmatmul.mubr.f32.gmra.mrb[8].mxu0 %v2938_v7 }
  0xcd   :  { %2209 = vmatprep.mubr.msk.f32.mxu1 %vm2552_vm0, %v2553_v3 }
  0xd0   :  { %2210 = vmatmul.mubr.f32.gmra.mrb[8].mxu1 %v2956_v44 }
 0x18f   :  { %v784_v16 = vpop.f32.mrb[0].mxu0 }
 0x190   :  { %v2013_v22 = vpop.f32.mrb[1].mxu0  ;;  %v812_v29 = vmul.f32 %v784_v16, %v784_v16 }
 0x193   :  { %v1564_v30 = vpop.f32.mrb[0].mxu1  ;;  %v790_v38 = vpop.f32.mrb[2].mxu0 }
 0x194   :  { %v1608_v51 = vmul.f32 %v1564_v30, %v784_v16  ;;  %v2199_v54 = vpop.f32.mrb[1].mxu1  ;;  %v813_v59 = vmul.f32 %v790_v38, %v790_v38  ;;  %v2016_v62 = vpop.f32.mrb[3].mxu0  ;;  %v1592_v36 = vmul.f32 %v1564_v30, %v1564_v30 }
 0x196   :  { %v817_v4 = vadd.f32 %v813_v59, %v812_v29 }
 0x197   :  { %v1570_v15 = vpop.f32.mrb[2].mxu1  ;;  %v796_v34 = vpop.f32.mrb[4].mxu0 }
 0x198   :  { %v1593_v25 = vmul.f32 %v1570_v15, %v1570_v15  ;;  %v1609_v43 = vmul.f32 %v1570_v15, %v790_v38  ;;  %v2202_v58 = vpop.f32.mrb[3].mxu1  ;;  %v814_v5 = vmul.f32 %v796_v34, %v796_v34  ;;  %v2019_v3 = vpop.f32.mrb[5].mxu0 }
 0x19a   :  { %v1597_v45 = vadd.f32 %v1593_v25, %v1592_v36  ;;  %v1613_v46 = vadd.f32 %v1609_v43, %v1608_v51  ;;  %v818_v18 = vadd.f32 %v817_v4, %v814_v5 }
 0x19b   :  { %v1576_v33 = vpop.f32.mrb[4].mxu1  ;;  %v802_v10 = vpop.f32.mrb[6].mxu0 }
 0x19c   :  { %v1594_v49 = vmul.f32 %v1576_v33, %v1576_v33  ;;  %v1610_v48 = vmul.f32 %v1576_v33, %v796_v34  ;;  %v2205_v14 = vpop.f32.mrb[5].mxu1  ;;  %v815_v53 = vmul.f32 %v802_v10, %v802_v10  ;;  %v2022_v7 = vpop.f32.mrb[7].mxu0 }
 0x19e   :  { %v1598_v27 = vadd.f32 %v1597_v45, %v1594_v49  ;;  %v1614_v31 = vadd.f32 %v1613_v46, %v1610_v48  ;;  %v819_v44 = vadd.f32 %v818_v18, %v815_v53 }
 0x19f   :  { %v1582_v11 = vpop.f32.mrb[6].mxu1  ;;  %v808_v32 = vpop.f32.mrb[8].mxu0 }
 0x1a0   :  { %v1595_v52 = vmul.f32 %v1582_v11, %v1582_v11  ;;  %v1611_v0 = vmul.f32 %v1582_v11, %v802_v10  ;;  %v2208_v6 = vpop.f32.mrb[7].mxu1  ;;  %v816_v9 = vmul.f32 %v808_v32, %v808_v32  ;;  %v2025_v41 = vpop.f32.mrb[9].mxu0 }
 0x1a2   :  { %v1599_v37 = vadd.f32 %v1598_v27, %v1595_v52  ;;  %v1615_v19 = vadd.f32 %v1614_v31, %v1611_v0  ;;  %v820_v8 = vadd.f32 %v819_v44, %v816_v9 }
 0x1a3   :  { %v1588_v47 = vpop.f32.mrb[8].mxu1 }
 0x1a4   :  { %v821_v28 = vrot.slane %v820_v8, 4  ;;  %v1596_v55 = vmul.f32 %v1588_v47, %v1588_v47  ;;  %v1612_v63 = vmul.f32 %v1588_v47, %v808_v32  ;;  %v2211_v26 = vpop.f32.mrb[9].mxu1 }
 0x1a6   :  { %v822_v2 = vadd.f32 %v821_v28, %v820_v8  ;;  %v1600_v35 = vadd.f32 %v1599_v37, %v1596_v55  ;;  %v1616_v20 = vadd.f32 %v1615_v19, %v1612_v63 }
 0x1a8   :  { %v823_v21 = vrot.slane %v822_v2, 2  ;;  %v1601_v23 = vrot.slane %v1600_v35, 4  ;;  %v1617_v24 = vrot.slane %v1616_v20, 4 }
 0x1aa   :  { %v824_v39 = vadd.f32 %v823_v21, %v822_v2  ;;  %v1602_v40 = vadd.f32 %v1601_v23, %v1600_v35  ;;  %v1618_v42 = vadd.f32 %v1617_v24, %v1616_v20 }
 0x1ac   :  { %v1603_v50 = vrot.slane %v1602_v40, 2  ;;  %v1619_v56 = vrot.slane %v1618_v42, 2  ;;  %v825_v57 = vrot.slane %v824_v39, 1 }
 0x1ae   :  { %v1604_v1 = vadd.f32 %v1603_v50, %v1602_v40  ;;  %v1620_v60 = vadd.f32 %v1619_v56, %v1618_v42  ;;  %v826_v61 = vadd.f32 %v825_v57, %v824_v39 }
 0x1b0   :  { %827 = vst [vmem:[#allocation8 + $0x1] sm:$0x1] %v826_v61  ;;  %v1605_v12 = vrot.slane %v1604_v1, 1  ;;  %v1621_v17 = vrot.slane %v1620_v60, 1 }
 0x1b2   :  { %v1606_v13 = vadd.f32 %v1605_v12, %v1604_v1  ;;  %v1622_v16 = vadd.f32 %v1621_v17, %v1620_v60 }
 0x1b4   :  { %1607 = vst [vmem:[#allocation8 + $0x2] sm:$0x1] %v1606_v13  ;;  %1623 = vst [vmem:[#allocation8] sm:$0x1] %v1622_v16 }
 0x1b5   :  { %2529 = shalt.err (!%p2526_p0)
}
 0x1b6   :  { %s2530_s5 = scalar_lea.hbm %s3307_s4, 64 }
 0x1b7   :  { %p2531_p1 = scmp.ne.s32.totalorder %s3307_s4, %s2530_s5  ;;  %p2534_p2 = scmp.lt.u32.totalorder %s2530_s5, %s3307_s4 }
 0x1b9   :  { %p2536_p3 = pnand %p2534_p2, %p2531_p1 }
 0x1bb   :  { %2539 = shalt.err (!%p2536_p3)
}
 0x1bc   :  { %1633 = dma.vmem_to_hbm [thread:$0]  %s1631_s26, 64, %s3307_s4, [#allocation4]  }
 0x1bd   :  { %2544 = dma.done.wait [#allocation4], 64  }
 0x1be   :  { %2545 = vsyncadd [#allocation4], 4294967232 }
 0x1bf   :  { %1637 = vsyncpa [#allocation3], 1 }
 0x1c0   :  { %1638 = vsyncpa [#allocation6], 1 }
 0x1c1   :  { %1639 = vsyncpa [#allocation4], 1 }

</bundles_post_ra>
